<compile_context>
chip_gen: v5e
topology: v5e:2x2
jax: 0.10.0
libtpu: 0.0.40
codegen_flags: <defaults>
</compile_context>

<pallas_src>
import functools

import jax
import jax.numpy as jnp
from jax.experimental import pallas as pl
from jax.experimental.pallas import tpu as pltpu


def _round_up(x, m):
    return (x + m - 1) // m * m


# ----------------------------------------------------------------------------
# Context projection kernel: state[-1] @ W_ih_ctx  (time-invariant, once per call).
# Grid over the fused gate column blocks (width Hp each) keeps VMEM blocks small.
# ----------------------------------------------------------------------------
def _ctx_matmul_kernel(h_ref, w_ref, o_ref):
    o_ref[...] = jnp.dot(h_ref[...].astype(w_ref.dtype), w_ref[...],
                         preferred_element_type=jnp.float32)


def ctx_matmul(h, wc):
    """h: (Bp, Hp) f32, wc: (Hp, 3Hp) bf16 -> (Bp, 3Hp) f32."""
    Bp, Hp = h.shape
    _, G3 = wc.shape
    hidden = G3 // 3
    return pl.pallas_call(
        _ctx_matmul_kernel,
        out_shape=jax.ShapeDtypeStruct((Bp, G3), jnp.float32),
        grid=(G3 // hidden,),
        in_specs=[pl.BlockSpec((Bp, Hp), lambda j: (0, 0)),
                  pl.BlockSpec((Hp, hidden), lambda j: (0, j))],
        out_specs=pl.BlockSpec((Bp, hidden), lambda j: (0, j)),
        compiler_params=pltpu.CompilerParams(dimension_semantics=("parallel",)),
    )(h, wc)


# ----------------------------------------------------------------------------
# Dense (vocab) projection:  (rows_p, Hp) @ (Hp, Vp) + b  with fixed 256-wide tiles.
# Vocab axis is the OUTERMOST grid axis so the weight block is loaded once per vocab tile
# and stays resident while all row tiles stream through.
# ----------------------------------------------------------------------------
def _dense_kernel(y_ref, w_ref, b_ref, o_ref):
    o_ref[...] = (jnp.dot(y_ref[...], w_ref[...], preferred_element_type=jnp.float32)
                  + b_ref[...])


def dense_matmul(y_rows, w, b, *, tile_m=256):
    M, K = y_rows.shape
    _, N = w.shape
    assert M % tile_m == 0 and N % 128 == 0
    tile_n = 256 if N % 256 == 0 else 128
    return pl.pallas_call(
        _dense_kernel,
        out_shape=jax.ShapeDtypeStruct((M, N), jnp.float32),
        grid=(N // tile_n, M // tile_m),          # (vocab tiles OUTER, row tiles inner)
        in_specs=[
            pl.BlockSpec((tile_m, K), lambda j, i: (i, 0)),
            pl.BlockSpec((K, tile_n), lambda j, i: (0, j)),   # resident across inner i loop
            pl.BlockSpec((1, tile_n), lambda j, i: (0, j)),
        ],
        out_specs=pl.BlockSpec((tile_m, tile_n), lambda j, i: (i, j)),
        compiler_params=pltpu.CompilerParams(
            dimension_semantics=("parallel", "parallel")),
    )(y_rows, w, b)


# ----------------------------------------------------------------------------
# GRU recurrence kernel with fused input projection.
#   * One grid step == block_t timesteps for one batch block; hidden state carried in VMEM.
#   * gi_block = x_block @ W_x (W_x resident, bf16, f32 accumulate) computed once per grid step
#     and cached in VMEM scratch; per timestep only h @ W_hh (fused 3-gate) runs.
#   * gadd = context @ W_ih_ctx + b_ih + [b_hr, b_hz, 0] is a time-invariant additive term.
#   * Gate order (PyTorch): r, z, n;  n = tanh(gi_n + r * (gh_n + b_hn)).
#   * Only the last time block may contain padded steps: it statically runs `rem` real steps
#     (no per-step masking on the serial critical path).
# ----------------------------------------------------------------------------
def _gru_scan_kernel(x_ref, wx_ref, gadd_ref, whh_ref, bhn_ref, h0_ref,
                     y_ref, hN_ref, h_scr, gi_scr, *, block_t, hidden, rem, unroll):
    tb = pl.program_id(1)
    last = pl.num_programs(1) - 1

    @pl.when(tb == 0)
    def _():
        h_scr[...] = h0_ref[...]

    bt, bb, din = x_ref.shape
    # Fused input projection for the whole time block (hides under the serial recurrence).
    gi = jnp.dot(x_ref[...].reshape(bt * bb, din), wx_ref[...],
                 preferred_element_type=jnp.float32)
    gi_scr[...] = gi.reshape(bt, bb, 3 * hidden) + gadd_ref[...]

    whh = whh_ref[...]          # (Hp, 3Hp) bf16, resident weight
    bhn = bhn_ref[...]          # (1, Hp)  f32

    def step(i, carry):
        h = h_scr[...]                                              # (bb, Hp) f32
        gi_i = gi_scr[i]                                            # (bb, 3Hp) f32
        # TODO(synk): could keep W_hh staged in the MXU across the unrolled steps via
        # pltpu.matmul_push_rhs / matmul_acc_lhs; rely on Mosaic hoisting for now.
        gh = jnp.dot(h.astype(whh.dtype), whh,
                     preferred_element_type=jnp.float32)            # (bb, 3Hp)
        r = jax.nn.sigmoid(gi_i[:, :hidden] + gh[:, :hidden])
        z = jax.nn.sigmoid(gi_i[:, hidden:2 * hidden] + gh[:, hidden:2 * hidden])
        n = jnp.tanh(gi_i[:, 2 * hidden:] + r * (gh[:, 2 * hidden:] + bhn))
        h_new = (1.0 - z) * n + z * h
        h_scr[...] = h_new
        y_ref[i] = h_new.astype(y_ref.dtype)
        return carry

    if rem == block_t:
        # No padded timesteps anywhere: single unmasked fast path.
        jax.lax.fori_loop(0, block_t, step, 0, unroll=min(unroll, block_t))

        @pl.when(tb == last)
        def _():
            hN_ref[...] = h_scr[...]
    else:
        @pl.when(tb != last)
        def _():
            jax.lax.fori_loop(0, block_t, step, 0, unroll=min(unroll, block_t))

        @pl.when(tb == last)
        def _():
            y_ref[...] = jnp.zeros_like(y_ref)          # deterministic padded tail rows
            jax.lax.fori_loop(0, rem, step, 0, unroll=min(unroll, rem))
            hN_ref[...] = h_scr[...]


def gru_scan(x, wx, gadd, whh, bhn, h0, *, seq_len, block_t, block_b, hidden, unroll):
    """x: (Tp, Bp, Din) bf16, wx: (Din, 3Hp) bf16, gadd: (Bp, 3Hp) f32, whh: (Hp, 3Hp) bf16,
    bhn: (1, Hp) f32, h0: (Bp, Hp) f32.
    Returns y: (Tp, Bp, Hp) bf16 and h_final: (Bp, Hp) f32."""
    Tp, Bp, Din = x.shape
    G3 = 3 * hidden
    assert Tp % block_t == 0 and Bp % block_b == 0
    n_tb = Tp // block_t
    rem = seq_len - (n_tb - 1) * block_t        # real steps in the last time block

    # Rough VMEM budget (double-buffered x/y blocks + resident weights + scratch), clamped so it
    # is valid on every generation (v7x physical VMEM is 64 MiB).
    est = (2 * block_t * block_b * Din * 2 +
           2 * block_t * block_b * hidden * 2 +
           Din * G3 * 2 + hidden * G3 * 2 +
           block_t * block_b * G3 * 4 +
           block_b * (G3 + 2 * hidden) * 4 + (1 << 20))
    vmem_limit = int(min(48 * 2**20, max(16 * 2**20, 2 * est)))

    kernel = functools.partial(_gru_scan_kernel, block_t=block_t, hidden=hidden,
                               rem=rem, unroll=unroll)
    y, h_final = pl.pallas_call(
        kernel,
        out_shape=(
            jax.ShapeDtypeStruct((Tp, Bp, hidden), jnp.bfloat16),
            jax.ShapeDtypeStruct((Bp, hidden), jnp.float32),
        ),
        grid=(Bp // block_b, n_tb),             # (batch blocks PARALLEL, time blocks sequential)
        in_specs=[
            pl.BlockSpec((block_t, block_b, Din), lambda b, tb: (tb, b, 0)),   # x time-block
            pl.BlockSpec((Din, G3), lambda b, tb: (0, 0)),                     # W_x (resident)
            pl.BlockSpec((block_b, G3), lambda b, tb: (b, 0)),                 # gadd
            pl.BlockSpec((hidden, G3), lambda b, tb: (0, 0)),                  # W_hh (resident)
            pl.BlockSpec((1, hidden), lambda b, tb: (0, 0)),                   # b_hn
            pl.BlockSpec((block_b, hidden), lambda b, tb: (b, 0)),             # h0
        ],
        out_specs=(
            pl.BlockSpec((block_t, block_b, hidden), lambda b, tb: (tb, b, 0)),  # y time-block
            pl.BlockSpec((block_b, hidden), lambda b, tb: (b, 0)),               # h_final
        ),
        scratch_shapes=[pltpu.VMEM((block_b, hidden), jnp.float32),
                        pltpu.VMEM((block_t, block_b, G3), jnp.float32)],
        # Time axis MUST stay "arbitrary": the recurrence is sequential and h_final relies on it.
        compiler_params=pltpu.CompilerParams(
            dimension_semantics=("parallel", "arbitrary"),
            vmem_limit_bytes=vmem_limit),
    )(x, wx, gadd, whh, bhn, h0)
    return y, h_final


# ----------------------------------------------------------------------------
# One-time parameter preparation: gate fusion, (8,128)-aligned padding, bf16 weight cast.
# ----------------------------------------------------------------------------
def _fuse_pad_gate_weight(w3, in_dim_p, hp, dtype):
    """(3, in_dim, H) per-gate weights -> fused, zero-padded (in_dim_p, 3*hp)."""
    g, in_dim, h = w3.shape
    out = jnp.zeros((in_dim_p, g * hp), jnp.float32)
    for i in range(g):
        out = out.at[:in_dim, i * hp:i * hp + h].set(w3[i].astype(jnp.float32))
    return out.astype(dtype)


def _fuse_pad_gate_bias(b3, hp):
    """(3, 1, H) per-gate biases -> fused, zero-padded (1, 3*hp) f32."""
    g, _, h = b3.shape
    out = jnp.zeros((1, g * hp), jnp.float32)
    for i in range(g):
        out = out.at[:, i * hp:i * hp + h].set(b3[i].astype(jnp.float32))
    return out


def prepare_params(params):
    """Fuse / pad / cast all weights once (call outside the per-step forward)."""
    bf16 = jnp.bfloat16
    E = params["embedding"].shape[1]
    H = params["gru"][0]["whh"].shape[2]
    V = params["dense_w"].shape[1]
    Ep, Hp, Vp = _round_up(E, 128), _round_up(H, 128), _round_up(V, 128)

    prep = {
        "dims": (E, H, V, Ep, Hp, Vp),
        "embedding": params["embedding"].astype(bf16),
        "dense_w": jnp.zeros((Hp, Vp), bf16).at[:H, :V].set(params["dense_w"].astype(bf16)),
        "dense_b": jnp.zeros((1, Vp), jnp.float32).at[:, :V].set(
            params["dense_b"].astype(jnp.float32)),
        "gru": [],
    }
    for l, p in enumerate(params["gru"]):
        whh_p = _fuse_pad_gate_weight(p["whh"], Hp, Hp, bf16)        # (Hp, 3Hp)
        bih_p = _fuse_pad_gate_bias(p["bih"], Hp)                    # (1, 3Hp)
        bhh_p = _fuse_pad_gate_bias(p["bhh"], Hp)                    # (1, 3Hp)
        bias_fold = bih_p + bhh_p.at[:, 2 * Hp:].set(0.0)            # b_ih + [b_hr, b_hz, 0]
        bhn_p = bhh_p[:, 2 * Hp:]                                    # (1, Hp)
        if l == 0:
            wih = p["wih"]                                           # (3, E+H, H)
            wx_p = _fuse_pad_gate_weight(wih[:, :E, :], Ep, Hp, bf16)  # (Ep, 3Hp)
            wc_p = _fuse_pad_gate_weight(wih[:, E:, :], Hp, Hp, bf16)  # (Hp, 3Hp)
        else:
            wx_p = _fuse_pad_gate_weight(p["wih"], Hp, Hp, bf16)       # (Hp, 3Hp)
            wc_p = None
        prep["gru"].append({"wx": wx_p, "wc": wc_p, "whh": whh_p,
                            "bias_fold": bias_fold, "bhn": bhn_p})
    return prep


# ----------------------------------------------------------------------------
# Seq2SeqDecoder forward
# ----------------------------------------------------------------------------
def seq2seq_decoder_forward(prep, X_tokens, state, *, block_t=32, block_b=8, unroll=8):
    """X_tokens: (B, T) int32; state: (num_layers, B, H) f32.
    Returns (output: (B, T, vocab) f32, state_out: (num_layers, B, H) f32)."""
    E, H, V, Ep, Hp, Vp = prep["dims"]
    B, T = X_tokens.shape
    L = state.shape[0]
    bf16 = jnp.bfloat16

    Bp = _round_up(B, block_b)
    TT = min(block_t, _round_up(T, 8))
    Tp = _round_up(T, TT)

    # Embedding lookup (gather; plain-JAX glue) -> time-major, zero-padded (Tp, Bp, Ep) bf16.
    emb = jnp.take(prep["embedding"], X_tokens, axis=0)                 # (B, T, E) bf16
    x = jnp.transpose(emb, (1, 0, 2))                                   # (T, B, E)
    x_p = jnp.zeros((Tp, Bp, Ep), bf16).at[:T, :B, :E].set(x)

    # Initial hidden state, zero-padded (padded hidden columns provably stay zero).
    state_p = jnp.zeros((L, Bp, Hp), jnp.float32).at[:, :B, :H].set(state.astype(jnp.float32))

    # TODO(synk): inter-layer dropout is skipped (module default dropout=0 / eval semantics).
    new_states = []
    y_prev = x_p
    for l in range(L):
        p = prep["gru"][l]
        if l == 0:
            # Time-invariant context term: state[-1] @ W_ih_ctx, computed ONCE per sequence.
            gadd = ctx_matmul(state_p[L - 1], p["wc"]) + p["bias_fold"]     # (Bp, 3Hp)
        else:
            gadd = jnp.broadcast_to(p["bias_fold"], (Bp, 3 * Hp))
        y_prev, h_l = gru_scan(y_prev, p["wx"], gadd, p["whh"], p["bhn"], state_p[l],
                               seq_len=T, block_t=TT, block_b=block_b,
                               hidden=Hp, unroll=unroll)
        new_states.append(h_l[:B, :H])

    state_out = jnp.stack(new_states, axis=0)                           # (L, B, H)

    # Dense projection: transpose only the SMALL bf16 activations to (B, Tp, Hp) so the large
    # logits tensor is produced directly in (B, T, V) layout; rows padded to the 256 tile.
    rows = B * Tp
    rows_p = _round_up(rows, 256)
    y_bt = jnp.transpose(y_prev[:, :B], (1, 0, 2)).reshape(rows, Hp)    # (B*Tp, Hp) bf16
    y_rows = jnp.zeros((rows_p, Hp), bf16).at[:rows].set(y_bt)
    logits = dense_matmul(y_rows, prep["dense_w"], prep["dense_b"])     # (rows_p, Vp) f32
    output = logits[:rows].reshape(B, Tp, Vp)[:, :T, :V]
    return output, state_out


# ----------------------------------------------------------------------------
# Pure-JAX f32 reference (for correctness check)
# ----------------------------------------------------------------------------
def _ref_gru_layer(x_tbf, wih, whh, bih, bhh, h0):
    def step(h, x_t):
        gi = jnp.einsum("bi,gih->gbh", x_t, wih) + bih
        gh = jnp.einsum("bh,ghk->gbk", h, whh) + bhh
        r = jax.nn.sigmoid(gi[0] + gh[0])
        z = jax.nn.sigmoid(gi[1] + gh[1])
        n = jnp.tanh(gi[2] + r * gh[2])
        h_new = (1.0 - z) * n + z * h
        return h_new, h_new

    h_final, ys = jax.lax.scan(step, h0, x_tbf)
    return ys, h_final


def _ref_forward(params, X_tokens, state):
    B, T = X_tokens.shape
    num_layers, _, H = state.shape
    emb = jnp.take(params["embedding"], X_tokens, axis=0)
    x = jnp.transpose(emb, (1, 0, 2)).astype(jnp.float32)
    context = jnp.broadcast_to(state[-1][None], (T, B, H))
    inp = jnp.concatenate([x, context], axis=2)
    new_states = []
    for l in range(num_layers):
        p = params["gru"][l]
        inp, h_l = _ref_gru_layer(inp, p["wih"], p["whh"], p["bih"], p["bhh"], state[l])
        new_states.append(h_l)
    state_out = jnp.stack(new_states, axis=0)
    logits = inp.reshape(T * B, H) @ params["dense_w"] + params["dense_b"]
    output = jnp.transpose(logits.reshape(T, B, -1), (1, 0, 2))
    return output, state_out


# ----------------------------------------------------------------------------
# Deterministic parameter construction
# ----------------------------------------------------------------------------
def make_params(key, vocab_size, embed_size, num_hiddens, num_layers):
    keys = jax.random.split(key, 3 + 4 * num_layers)
    params = {
        "embedding": 0.1 * jax.random.normal(keys[0], (vocab_size, embed_size), jnp.float32),
        "dense_w": 0.1 * jax.random.normal(keys[1], (num_hiddens, vocab_size), jnp.float32),
        "dense_b": 0.1 * jax.random.normal(keys[2], (1, vocab_size), jnp.float32),
        "gru": [],
    }
    for l in range(num_layers):
        in_dim = (embed_size + num_hiddens) if l == 0 else num_hiddens
        k = keys[3 + 4 * l: 3 + 4 * (l + 1)]
        params["gru"].append({
            "wih": 0.1 * jax.random.normal(k[0], (3, in_dim, num_hiddens), jnp.float32),
            "whh": 0.1 * jax.random.normal(k[1], (3, num_hiddens, num_hiddens), jnp.float32),
            "bih": 0.1 * jax.random.normal(k[2], (3, 1, num_hiddens), jnp.float32),
            "bhh": 0.1 * jax.random.normal(k[3], (3, 1, num_hiddens), jnp.float32),
        })
    return params


if __name__ == "__main__":
    vocab_size, embed_size, num_hiddens, num_layers = 32, 16, 32, 2
    batch, seq_len = 2, 8

    root = jax.random.PRNGKey(0)
    k_params, k_tokens, k_state = jax.random.split(root, 3)

    params = make_params(k_params, vocab_size, embed_size, num_hiddens, num_layers)
    X_tokens = jax.random.randint(k_tokens, (batch, seq_len), 0, vocab_size, dtype=jnp.int32)
    # Decoder init_state == encoder's final hidden state: (num_layers, B, H)
    state = 0.1 * jax.random.normal(k_state, (num_layers, batch, num_hiddens), jnp.float32)

    prep = prepare_params(params)   # one-time weight fusion / padding / bf16 cast
    fwd = jax.jit(functools.partial(seq2seq_decoder_forward, prep))
    output, state_out = fwd(X_tokens, state)
    jax.block_until_ready((output, state_out))

    ref_out, ref_state = _ref_forward(params, X_tokens, state)
    assert output.shape == (batch, seq_len, vocab_size), output.shape
    assert state_out.shape == (num_layers, batch, num_hiddens), state_out.shape
    # bf16 MXU operands / bf16 inter-layer activations (f32 accumulate & carry) vs pure-f32 ref.
    assert jnp.allclose(output, ref_out, atol=2e-2, rtol=2e-2), float(jnp.max(jnp.abs(output - ref_out)))
    assert jnp.allclose(state_out, ref_state, atol=2e-2, rtol=2e-2), float(jnp.max(jnp.abs(state_out - ref_state)))

    print("KERNEL_OK")
</pallas_src>

<mosaic_0001>
module attributes {stable_mosaic.version = 11 : i64} {
  func.func @_ctx_matmul_kernel(%arg0: i32, %arg1: memref<8x128xf32, #tpu.memory_space<vmem>>, %arg2: memref<128x128xbf16, #tpu.memory_space<vmem>>, %arg3: memref<8x128xf32, #tpu.memory_space<vmem>>) attributes {dimension_semantics = [#tpu.dimension_semantics<parallel>], iteration_bounds = array<i64: 3>, scalar_prefetch = 0 : i64, scratch_operands = 0 : i64, tpu.core_type = #tpu.core_type<tc>, window_params = [{pipeline_mode = #tpu.pipeline_mode<synchronous>, transform_indices = @transform_0, window_bounds = array<i64: 8, 128>}, {transform_indices = @transform_1, window_bounds = array<i64: 128, 128>}, {transform_indices = @transform_2, window_bounds = array<i64: 8, 128>}]} {
    %c0 = arith.constant 0 : index
    %c0_0 = arith.constant 0 : index
    %0 = vector.load %arg1[%c0, %c0_0] : memref<8x128xf32, #tpu.memory_space<vmem>>, vector<8x128xf32>
    %1 = arith.truncf %0 : vector<8x128xf32> to vector<8x128xbf16>
    %c0_1 = arith.constant 0 : index
    %c0_2 = arith.constant 0 : index
    %2 = vector.load %arg2[%c0_1, %c0_2] : memref<128x128xbf16, #tpu.memory_space<vmem>>, vector<128x128xbf16>
    %cst = arith.constant dense<0.000000e+00> : vector<8x128xf32>
    %3 = tpu.matmul %1, %2, %cst {dimension_numbers = #tpu.dot_dimension_numbers<[1], [0], [0], [1], [0, 0, 1, 1], [], []>} : vector<8x128xbf16>, vector<128x128xbf16>, vector<8x128xf32> -> vector<8x128xf32>
    %c0_3 = arith.constant 0 : index
    %c0_4 = arith.constant 0 : index
    %4 = vector.load %arg3[%c0_3, %c0_4] : memref<8x128xf32, #tpu.memory_space<vmem>>, vector<8x128xf32>
    tpu.vector_store %arg3[%c0_3, %c0_4], %3 {strides = array<i32>} : memref<8x128xf32, #tpu.memory_space<vmem>>, vector<8x128xf32>,
    return
  }
  func.func @transform_0(%arg0: i32) -> (i32, i32) {
    %c0_i32 = arith.constant 0 : i32
    %c0_i32_0 = arith.constant 0 : i32
    %c0_i32_1 = arith.constant 0 : i32
    return %c0_i32, %c0_i32_0 : i32, i32
  }
  func.func @transform_1(%arg0: i32) -> (i32, i32) {
    %c0_i32 = arith.constant 0 : i32
    %c0_i32_0 = arith.constant 0 : i32
    return %c0_i32, %arg0 : i32, i32
  }
  func.func @transform_2(%arg0: i32) -> (i32, i32) {
    %c0_i32 = arith.constant 0 : i32
    %c0_i32_0 = arith.constant 0 : i32
    return %c0_i32, %arg0 : i32, i32
  }
}

module attributes {stable_mosaic.version = 11 : i64} {
  func.func @_dense_kernel(%arg0: i32, %arg1: i32, %arg2: memref<256x128xbf16, #tpu.memory_space<vmem>>, %arg3: memref<128x128xbf16, #tpu.memory_space<vmem>>, %arg4: memref<1x128xf32, #tpu.memory_space<vmem>>, %arg5: memref<256x128xf32, #tpu.memory_space<vmem>>) attributes {dimension_semantics = [#tpu.dimension_semantics<parallel>, #tpu.dimension_semantics<parallel>], iteration_bounds = array<i64: 1, 1>, scalar_prefetch = 0 : i64, scratch_operands = 0 : i64, tpu.core_type = #tpu.core_type<tc>, window_params = [{transform_indices = @transform_0, window_bounds = array<i64: 256, 128>}, {transform_indices = @transform_1, window_bounds = array<i64: 128, 128>}, {transform_indices = @transform_2, window_bounds = array<i64: 1, 128>}, {transform_indices = @transform_3, window_bounds = array<i64: 256, 128>}]} {
    %c0 = arith.constant 0 : index
    %c0_0 = arith.constant 0 : index
    %0 = vector.load %arg2[%c0, %c0_0] : memref<256x128xbf16, #tpu.memory_space<vmem>>, vector<256x128xbf16>
    %c0_1 = arith.constant 0 : index
    %c0_2 = arith.constant 0 : index
    %1 = vector.load %arg3[%c0_1, %c0_2] : memref<128x128xbf16, #tpu.memory_space<vmem>>, vector<128x128xbf16>
    %cst = arith.constant dense<0.000000e+00> : vector<256x128xf32>
    %2 = tpu.matmul %0, %1, %cst {dimension_numbers = #tpu.dot_dimension_numbers<[1], [0], [0], [1], [0, 0, 1, 1], [], []>} : vector<256x128xbf16>, vector<128x128xbf16>, vector<256x128xf32> -> vector<256x128xf32>
    %c0_3 = arith.constant 0 : index
    %c0_4 = arith.constant 0 : index
    %3 = vector.load %arg4[%c0_3, %c0_4] : memref<1x128xf32, #tpu.memory_space<vmem>>, vector<1x128xf32>
    %4 = vector.broadcast %3 : vector<1x128xf32> to vector<256x128xf32>
    %5 = arith.addf %2, %4 : vector<256x128xf32>
    %c0_5 = arith.constant 0 : index
    %c0_6 = arith.constant 0 : index
    %6 = vector.load %arg5[%c0_5, %c0_6] : memref<256x128xf32, #tpu.memory_space<vmem>>, vector<256x128xf32>
    tpu.vector_store %arg5[%c0_5, %c0_6], %5 {strides = array<i32>} : memref<256x128xf32, #tpu.memory_space<vmem>>, vector<256x128xf32>,
    return
  }
  func.func @transform_0(%arg0: i32, %arg1: i32) -> (i32, i32) {
    %c0_i32 = arith.constant 0 : i32
    %c0_i32_0 = arith.constant 0 : i32
    return %arg1, %c0_i32 : i32, i32
  }
  func.func @transform_1(%arg0: i32, %arg1: i32) -> (i32, i32) {
    %c0_i32 = arith.constant 0 : i32
    %c0_i32_0 = arith.constant 0 : i32
    return %c0_i32, %arg0 : i32, i32
  }
  func.func @transform_2(%arg0: i32, %arg1: i32) -> (i32, i32) {
    %c0_i32 = arith.constant 0 : i32
    %c0_i32_0 = arith.constant 0 : i32
    return %c0_i32, %arg0 : i32, i32
  }
  func.func @transform_3(%arg0: i32, %arg1: i32) -> (i32, i32) {
    %c0_i32 = arith.constant 0 : i32
    return %arg1, %arg0 : i32, i32
  }
}

module attributes {stable_mosaic.version = 11 : i64} {
  func.func @_gru_scan_kernel(%arg0: i32, %arg1: i32, %arg2: memref<8x8x128xbf16, #tpu.memory_space<vmem>>, %arg3: memref<128x384xbf16, #tpu.memory_space<vmem>>, %arg4: memref<8x384xf32, #tpu.memory_space<vmem>>, %arg5: memref<128x384xbf16, #tpu.memory_space<vmem>>, %arg6: memref<1x128xf32, #tpu.memory_space<vmem>>, %arg7: memref<8x128xf32, #tpu.memory_space<vmem>>, %arg8: memref<8x8x128xbf16, #tpu.memory_space<vmem>>, %arg9: memref<8x128xf32, #tpu.memory_space<vmem>>, %arg10: memref<8x128xf32, #tpu.memory_space<vmem>>, %arg11: memref<8x8x384xf32, #tpu.memory_space<vmem>>) attributes {dimension_semantics = [#tpu.dimension_semantics<parallel>, #tpu.dimension_semantics<arbitrary>], iteration_bounds = array<i64: 1, 1>, scalar_prefetch = 0 : i64, scratch_operands = 2 : i64, tpu.core_type = #tpu.core_type<tc>, window_params = [{transform_indices = @transform_0, window_bounds = array<i64: 8, 8, 128>}, {pipeline_mode = #tpu.pipeline_mode<synchronous>, transform_indices = @transform_1, window_bounds = array<i64: 128, 384>}, {transform_indices = @transform_2, window_bounds = array<i64: 8, 384>}, {pipeline_mode = #tpu.pipeline_mode<synchronous>, transform_indices = @transform_3, window_bounds = array<i64: 128, 384>}, {pipeline_mode = #tpu.pipeline_mode<synchronous>, transform_indices = @transform_4, window_bounds = array<i64: 1, 128>}, {transform_indices = @transform_5, window_bounds = array<i64: 8, 128>}, {transform_indices = @transform_6, window_bounds = array<i64: 8, 8, 128>}, {transform_indices = @transform_7, window_bounds = array<i64: 8, 128>}]} {
    %c0_i32 = arith.constant 0 : i32
    %0 = arith.cmpi eq, %arg1, %c0_i32 : i32
    %1 = arith.extui %0 : i1 to i32
    %c0_i32_0 = arith.constant 0 : i32
    %2 = arith.cmpi ne, %1, %c0_i32_0 : i32
    scf.if %2 {
      %c0_113 = arith.constant 0 : index
      %c0_114 = arith.constant 0 : index
      %338 = vector.load %arg7[%c0_113, %c0_114] : memref<8x128xf32, #tpu.memory_space<vmem>>, vector<8x128xf32>
      %c0_115 = arith.constant 0 : index
      %c0_116 = arith.constant 0 : index
      %339 = vector.load %arg10[%c0_115, %c0_116] : memref<8x128xf32, #tpu.memory_space<vmem>>, vector<8x128xf32>
      tpu.vector_store %arg10[%c0_115, %c0_116], %338 {strides = array<i32>} : memref<8x128xf32, #tpu.memory_space<vmem>>, vector<8x128xf32>,
    } else {
    }
    %c0 = arith.constant 0 : index
    %c0_1 = arith.constant 0 : index
    %c0_2 = arith.constant 0 : index
    %3 = vector.load %arg2[%c0, %c0_1, %c0_2] : memref<8x8x128xbf16, #tpu.memory_space<vmem>>, vector<8x8x128xbf16>
    %4 = vector.shape_cast %3 : vector<8x8x128xbf16> to vector<64x128xbf16>
    %c0_3 = arith.constant 0 : index
    %c0_4 = arith.constant 0 : index
    %5 = vector.load %arg3[%c0_3, %c0_4] : memref<128x384xbf16, #tpu.memory_space<vmem>>, vector<128x384xbf16>
    %cst = arith.constant dense<0.000000e+00> : vector<64x384xf32>
    %6 = tpu.matmul %4, %5, %cst {dimension_numbers = #tpu.dot_dimension_numbers<[1], [0], [0], [1], [0, 0, 1, 1], [], []>} : vector<64x128xbf16>, vector<128x384xbf16>, vector<64x384xf32> -> vector<64x384xf32>
    %7 = vector.shape_cast %6 : vector<64x384xf32> to vector<8x8x384xf32>
    %c0_5 = arith.constant 0 : index
    %c0_6 = arith.constant 0 : index
    %8 = vector.load %arg4[%c0_5, %c0_6] : memref<8x384xf32, #tpu.memory_space<vmem>>, vector<8x384xf32>
    %9 = vector.shape_cast %8 : vector<8x384xf32> to vector<1x8x384xf32>
    %10 = vector.broadcast %9 : vector<1x8x384xf32> to vector<8x8x384xf32>
    %11 = arith.addf %7, %10 : vector<8x8x384xf32>
    %c0_7 = arith.constant 0 : index
    %c0_8 = arith.constant 0 : index
    %c0_9 = arith.constant 0 : index
    %12 = vector.load %arg11[%c0_7, %c0_8, %c0_9] : memref<8x8x384xf32, #tpu.memory_space<vmem>>, vector<8x8x384xf32>
    tpu.vector_store %arg11[%c0_7, %c0_8, %c0_9], %11 {strides = array<i32>} : memref<8x8x384xf32, #tpu.memory_space<vmem>>, vector<8x8x384xf32>,
    %c0_10 = arith.constant 0 : index
    %c0_11 = arith.constant 0 : index
    %13 = vector.load %arg5[%c0_10, %c0_11] : memref<128x384xbf16, #tpu.memory_space<vmem>>, vector<128x384xbf16>
    %c0_12 = arith.constant 0 : index
    %c0_13 = arith.constant 0 : index
    %14 = vector.load %arg6[%c0_12, %c0_13] : memref<1x128xf32, #tpu.memory_space<vmem>>, vector<1x128xf32>
    %c0_i32_14 = arith.constant 0 : i32
    %c0_15 = arith.constant 0 : index
    %c0_16 = arith.constant 0 : index
    %15 = vector.load %arg10[%c0_15, %c0_16] : memref<8x128xf32, #tpu.memory_space<vmem>>, vector<8x128xf32>
    %16 = arith.index_cast %c0_i32_14 : i32 to index
    %c0_17 = arith.constant 0 : index
    %c0_18 = arith.constant 0 : index
    %17 = vector.load %arg11[%16, %c0_17, %c0_18] : memref<8x8x384xf32, #tpu.memory_space<vmem>>, vector<1x8x384xf32>
    %18 = vector.shape_cast %17 : vector<1x8x384xf32> to vector<8x384xf32>
    %19 = arith.truncf %15 : vector<8x128xf32> to vector<8x128xbf16>
    %cst_19 = arith.constant dense<0.000000e+00> : vector<8x384xf32>
    %20 = tpu.matmul %19, %13, %cst_19 {dimension_numbers = #tpu.dot_dimension_numbers<[1], [0], [0], [1], [0, 0, 1, 1], [], []>} : vector<8x128xbf16>, vector<128x384xbf16>, vector<8x384xf32> -> vector<8x384xf32>
    %21 = vector.extract_strided_slice %18 {offsets = [0, 0], sizes = [8, 128], strides = [1, 1]} : vector<8x384xf32> to vector<8x128xf32>
    %22 = vector.extract_strided_slice %20 {offsets = [0, 0], sizes = [8, 128], strides = [1, 1]} : vector<8x384xf32> to vector<8x128xf32>
    %23 = arith.addf %21, %22 : vector<8x128xf32>
    %24 = arith.negf %23 : vector<8x128xf32>
    %25 = math.exp %24 : vector<8x128xf32>
    %cst_20 = arith.constant 1.000000e+00 : f32
    %26 = vector.broadcast %cst_20 : f32 to vector<8x128xf32>
    %27 = arith.addf %26, %25 : vector<8x128xf32>
    %28 = arith.divf %26, %27 : vector<8x128xf32>
    %29 = vector.extract_strided_slice %18 {offsets = [0, 128], sizes = [8, 128], strides = [1, 1]} : vector<8x384xf32> to vector<8x128xf32>
    %30 = vector.extract_strided_slice %20 {offsets = [0, 128], sizes = [8, 128], strides = [1, 1]} : vector<8x384xf32> to vector<8x128xf32>
    %31 = arith.addf %29, %30 : vector<8x128xf32>
    %32 = arith.negf %31 : vector<8x128xf32>
    %33 = math.exp %32 : vector<8x128xf32>
    %cst_21 = arith.constant 1.000000e+00 : f32
    %34 = vector.broadcast %cst_21 : f32 to vector<8x128xf32>
    %35 = arith.addf %34, %33 : vector<8x128xf32>
    %36 = arith.divf %34, %35 : vector<8x128xf32>
    %37 = vector.extract_strided_slice %18 {offsets = [0, 256], sizes = [8, 128], strides = [1, 1]} : vector<8x384xf32> to vector<8x128xf32>
    %38 = vector.extract_strided_slice %20 {offsets = [0, 256], sizes = [8, 128], strides = [1, 1]} : vector<8x384xf32> to vector<8x128xf32>
    %39 = vector.broadcast %14 : vector<1x128xf32> to vector<8x128xf32>
    %40 = arith.addf %38, %39 : vector<8x128xf32>
    %41 = arith.mulf %28, %40 : vector<8x128xf32>
    %42 = arith.addf %37, %41 : vector<8x128xf32>
    %43 = math.tanh %42 : vector<8x128xf32>
    %cst_22 = arith.constant 1.000000e+00 : f32
    %44 = vector.broadcast %cst_22 : f32 to vector<8x128xf32>
    %45 = arith.subf %44, %36 : vector<8x128xf32>
    %46 = arith.mulf %45, %43 : vector<8x128xf32>
    %47 = arith.mulf %36, %15 : vector<8x128xf32>
    %48 = arith.addf %46, %47 : vector<8x128xf32>
    %c0_23 = arith.constant 0 : index
    %c0_24 = arith.constant 0 : index
    %49 = vector.load %arg10[%c0_23, %c0_24] : memref<8x128xf32, #tpu.memory_space<vmem>>, vector<8x128xf32>
    tpu.vector_store %arg10[%c0_23, %c0_24], %48 {strides = array<i32>} : memref<8x128xf32, #tpu.memory_space<vmem>>, vector<8x128xf32>,
    %50 = arith.truncf %48 : vector<8x128xf32> to vector<8x128xbf16>
    %51 = arith.index_cast %c0_i32_14 : i32 to index
    %c0_25 = arith.constant 0 : index
    %c0_26 = arith.constant 0 : index
    %52 = vector.load %arg8[%51, %c0_25, %c0_26] : memref<8x8x128xbf16, #tpu.memory_space<vmem>>, vector<1x8x128xbf16>
    %53 = vector.shape_cast %52 : vector<1x8x128xbf16> to vector<8x128xbf16>
    %54 = vector.shape_cast %50 : vector<8x128xbf16> to vector<1x8x128xbf16>
    tpu.vector_store %arg8[%51, %c0_25, %c0_26], %54 {strides = array<i32>} : memref<8x8x128xbf16, #tpu.memory_space<vmem>>, vector<1x8x128xbf16>,
    %c1_i32 = arith.constant 1 : i32
    %c0_27 = arith.constant 0 : index
    %c0_28 = arith.constant 0 : index
    %55 = vector.load %arg10[%c0_27, %c0_28] : memref<8x128xf32, #tpu.memory_space<vmem>>, vector<8x128xf32>
    %56 = arith.index_cast %c1_i32 : i32 to index
    %c0_29 = arith.constant 0 : index
    %c0_30 = arith.constant 0 : index
    %57 = vector.load %arg11[%56, %c0_29, %c0_30] : memref<8x8x384xf32, #tpu.memory_space<vmem>>, vector<1x8x384xf32>
    %58 = vector.shape_cast %57 : vector<1x8x384xf32> to vector<8x384xf32>
    %59 = arith.truncf %55 : vector<8x128xf32> to vector<8x128xbf16>
    %cst_31 = arith.constant dense<0.000000e+00> : vector<8x384xf32>
    %60 = tpu.matmul %59, %13, %cst_31 {dimension_numbers = #tpu.dot_dimension_numbers<[1], [0], [0], [1], [0, 0, 1, 1], [], []>} : vector<8x128xbf16>, vector<128x384xbf16>, vector<8x384xf32> -> vector<8x384xf32>
    %61 = vector.extract_strided_slice %58 {offsets = [0, 0], sizes = [8, 128], strides = [1, 1]} : vector<8x384xf32> to vector<8x128xf32>
    %62 = vector.extract_strided_slice %60 {offsets = [0, 0], sizes = [8, 128], strides = [1, 1]} : vector<8x384xf32> to vector<8x128xf32>
    %63 = arith.addf %61, %62 : vector<8x128xf32>
    %64 = arith.negf %63 : vector<8x128xf32>
    %65 = math.exp %64 : vector<8x128xf32>
    %cst_32 = arith.constant 1.000000e+00 : f32
    %66 = vector.broadcast %cst_32 : f32 to vector<8x128xf32>
    %67 = arith.addf %66, %65 : vector<8x128xf32>
    %68 = arith.divf %66, %67 : vector<8x128xf32>
    %69 = vector.extract_strided_slice %58 {offsets = [0, 128], sizes = [8, 128], strides = [1, 1]} : vector<8x384xf32> to vector<8x128xf32>
    %70 = vector.extract_strided_slice %60 {offsets = [0, 128], sizes = [8, 128], strides = [1, 1]} : vector<8x384xf32> to vector<8x128xf32>
    %71 = arith.addf %69, %70 : vector<8x128xf32>
    %72 = arith.negf %71 : vector<8x128xf32>
    %73 = math.exp %72 : vector<8x128xf32>
    %cst_33 = arith.constant 1.000000e+00 : f32
    %74 = vector.broadcast %cst_33 : f32 to vector<8x128xf32>
    %75 = arith.addf %74, %73 : vector<8x128xf32>
    %76 = arith.divf %74, %75 : vector<8x128xf32>
    %77 = vector.extract_strided_slice %58 {offsets = [0, 256], sizes = [8, 128], strides = [1, 1]} : vector<8x384xf32> to vector<8x128xf32>
    %78 = vector.extract_strided_slice %60 {offsets = [0, 256], sizes = [8, 128], strides = [1, 1]} : vector<8x384xf32> to vector<8x128xf32>
    %79 = vector.broadcast %14 : vector<1x128xf32> to vector<8x128xf32>
    %80 = arith.addf %78, %79 : vector<8x128xf32>
    %81 = arith.mulf %68, %80 : vector<8x128xf32>
    %82 = arith.addf %77, %81 : vector<8x128xf32>
    %83 = math.tanh %82 : vector<8x128xf32>
    %cst_34 = arith.constant 1.000000e+00 : f32
    %84 = vector.broadcast %cst_34 : f32 to vector<8x128xf32>
    %85 = arith.subf %84, %76 : vector<8x128xf32>
    %86 = arith.mulf %85, %83 : vector<8x128xf32>
    %87 = arith.mulf %76, %55 : vector<8x128xf32>
    %88 = arith.addf %86, %87 : vector<8x128xf32>
    %c0_35 = arith.constant 0 : index
    %c0_36 = arith.constant 0 : index
    %89 = vector.load %arg10[%c0_35, %c0_36] : memref<8x128xf32, #tpu.memory_space<vmem>>, vector<8x128xf32>
    tpu.vector_store %arg10[%c0_35, %c0_36], %88 {strides = array<i32>} : memref<8x128xf32, #tpu.memory_space<vmem>>, vector<8x128xf32>,
    %90 = arith.truncf %88 : vector<8x128xf32> to vector<8x128xbf16>
    %91 = arith.index_cast %c1_i32 : i32 to index
    %c0_37 = arith.constant 0 : index
    %c0_38 = arith.constant 0 : index
    %92 = vector.load %arg8[%91, %c0_37, %c0_38] : memref<8x8x128xbf16, #tpu.memory_space<vmem>>, vector<1x8x128xbf16>
    %93 = vector.shape_cast %92 : vector<1x8x128xbf16> to vector<8x128xbf16>
    %94 = vector.shape_cast %90 : vector<8x128xbf16> to vector<1x8x128xbf16>
    tpu.vector_store %arg8[%91, %c0_37, %c0_38], %94 {strides = array<i32>} : memref<8x8x128xbf16, #tpu.memory_space<vmem>>, vector<1x8x128xbf16>,
    %c2_i32 = arith.constant 2 : i32
    %c0_39 = arith.constant 0 : index
    %c0_40 = arith.constant 0 : index
    %95 = vector.load %arg10[%c0_39, %c0_40] : memref<8x128xf32, #tpu.memory_space<vmem>>, vector<8x128xf32>
    %96 = arith.index_cast %c2_i32 : i32 to index
    %c0_41 = arith.constant 0 : index
    %c0_42 = arith.constant 0 : index
    %97 = vector.load %arg11[%96, %c0_41, %c0_42] : memref<8x8x384xf32, #tpu.memory_space<vmem>>, vector<1x8x384xf32>
    %98 = vector.shape_cast %97 : vector<1x8x384xf32> to vector<8x384xf32>
    %99 = arith.truncf %95 : vector<8x128xf32> to vector<8x128xbf16>
    %cst_43 = arith.constant dense<0.000000e+00> : vector<8x384xf32>
    %100 = tpu.matmul %99, %13, %cst_43 {dimension_numbers = #tpu.dot_dimension_numbers<[1], [0], [0], [1], [0, 0, 1, 1], [], []>} : vector<8x128xbf16>, vector<128x384xbf16>, vector<8x384xf32> -> vector<8x384xf32>
    %101 = vector.extract_strided_slice %98 {offsets = [0, 0], sizes = [8, 128], strides = [1, 1]} : vector<8x384xf32> to vector<8x128xf32>
    %102 = vector.extract_strided_slice %100 {offsets = [0, 0], sizes = [8, 128], strides = [1, 1]} : vector<8x384xf32> to vector<8x128xf32>
    %103 = arith.addf %101, %102 : vector<8x128xf32>
    %104 = arith.negf %103 : vector<8x128xf32>
    %105 = math.exp %104 : vector<8x128xf32>
    %cst_44 = arith.constant 1.000000e+00 : f32
    %106 = vector.broadcast %cst_44 : f32 to vector<8x128xf32>
    %107 = arith.addf %106, %105 : vector<8x128xf32>
    %108 = arith.divf %106, %107 : vector<8x128xf32>
    %109 = vector.extract_strided_slice %98 {offsets = [0, 128], sizes = [8, 128], strides = [1, 1]} : vector<8x384xf32> to vector<8x128xf32>
    %110 = vector.extract_strided_slice %100 {offsets = [0, 128], sizes = [8, 128], strides = [1, 1]} : vector<8x384xf32> to vector<8x128xf32>
    %111 = arith.addf %109, %110 : vector<8x128xf32>
    %112 = arith.negf %111 : vector<8x128xf32>
    %113 = math.exp %112 : vector<8x128xf32>
    %cst_45 = arith.constant 1.000000e+00 : f32
    %114 = vector.broadcast %cst_45 : f32 to vector<8x128xf32>
    %115 = arith.addf %114, %113 : vector<8x128xf32>
    %116 = arith.divf %114, %115 : vector<8x128xf32>
    %117 = vector.extract_strided_slice %98 {offsets = [0, 256], sizes = [8, 128], strides = [1, 1]} : vector<8x384xf32> to vector<8x128xf32>
    %118 = vector.extract_strided_slice %100 {offsets = [0, 256], sizes = [8, 128], strides = [1, 1]} : vector<8x384xf32> to vector<8x128xf32>
    %119 = vector.broadcast %14 : vector<1x128xf32> to vector<8x128xf32>
    %120 = arith.addf %118, %119 : vector<8x128xf32>
    %121 = arith.mulf %108, %120 : vector<8x128xf32>
    %122 = arith.addf %117, %121 : vector<8x128xf32>
    %123 = math.tanh %122 : vector<8x128xf32>
    %cst_46 = arith.constant 1.000000e+00 : f32
    %124 = vector.broadcast %cst_46 : f32 to vector<8x128xf32>
    %125 = arith.subf %124, %116 : vector<8x128xf32>
    %126 = arith.mulf %125, %123 : vector<8x128xf32>
    %127 = arith.mulf %116, %95 : vector<8x128xf32>
    %128 = arith.addf %126, %127 : vector<8x128xf32>
    %c0_47 = arith.constant 0 : index
    %c0_48 = arith.constant 0 : index
    %129 = vector.load %arg10[%c0_47, %c0_48] : memref<8x128xf32, #tpu.memory_space<vmem>>, vector<8x128xf32>
    tpu.vector_store %arg10[%c0_47, %c0_48], %128 {strides = array<i32>} : memref<8x128xf32, #tpu.memory_space<vmem>>, vector<8x128xf32>,
    %130 = arith.truncf %128 : vector<8x128xf32> to vector<8x128xbf16>
    %131 = arith.index_cast %c2_i32 : i32 to index
    %c0_49 = arith.constant 0 : index
    %c0_50 = arith.constant 0 : index
    %132 = vector.load %arg8[%131, %c0_49, %c0_50] : memref<8x8x128xbf16, #tpu.memory_space<vmem>>, vector<1x8x128xbf16>
    %133 = vector.shape_cast %132 : vector<1x8x128xbf16> to vector<8x128xbf16>
    %134 = vector.shape_cast %130 : vector<8x128xbf16> to vector<1x8x128xbf16>
    tpu.vector_store %arg8[%131, %c0_49, %c0_50], %134 {strides = array<i32>} : memref<8x8x128xbf16, #tpu.memory_space<vmem>>, vector<1x8x128xbf16>,
    %c3_i32 = arith.constant 3 : i32
    %c0_51 = arith.constant 0 : index
    %c0_52 = arith.constant 0 : index
    %135 = vector.load %arg10[%c0_51, %c0_52] : memref<8x128xf32, #tpu.memory_space<vmem>>, vector<8x128xf32>
    %136 = arith.index_cast %c3_i32 : i32 to index
    %c0_53 = arith.constant 0 : index
    %c0_54 = arith.constant 0 : index
    %137 = vector.load %arg11[%136, %c0_53, %c0_54] : memref<8x8x384xf32, #tpu.memory_space<vmem>>, vector<1x8x384xf32>
    %138 = vector.shape_cast %137 : vector<1x8x384xf32> to vector<8x384xf32>
    %139 = arith.truncf %135 : vector<8x128xf32> to vector<8x128xbf16>
    %cst_55 = arith.constant dense<0.000000e+00> : vector<8x384xf32>
    %140 = tpu.matmul %139, %13, %cst_55 {dimension_numbers = #tpu.dot_dimension_numbers<[1], [0], [0], [1], [0, 0, 1, 1], [], []>} : vector<8x128xbf16>, vector<128x384xbf16>, vector<8x384xf32> -> vector<8x384xf32>
    %141 = vector.extract_strided_slice %138 {offsets = [0, 0], sizes = [8, 128], strides = [1, 1]} : vector<8x384xf32> to vector<8x128xf32>
    %142 = vector.extract_strided_slice %140 {offsets = [0, 0], sizes = [8, 128], strides = [1, 1]} : vector<8x384xf32> to vector<8x128xf32>
    %143 = arith.addf %141, %142 : vector<8x128xf32>
    %144 = arith.negf %143 : vector<8x128xf32>
    %145 = math.exp %144 : vector<8x128xf32>
    %cst_56 = arith.constant 1.000000e+00 : f32
    %146 = vector.broadcast %cst_56 : f32 to vector<8x128xf32>
    %147 = arith.addf %146, %145 : vector<8x128xf32>
    %148 = arith.divf %146, %147 : vector<8x128xf32>
    %149 = vector.extract_strided_slice %138 {offsets = [0, 128], sizes = [8, 128], strides = [1, 1]} : vector<8x384xf32> to vector<8x128xf32>
    %150 = vector.extract_strided_slice %140 {offsets = [0, 128], sizes = [8, 128], strides = [1, 1]} : vector<8x384xf32> to vector<8x128xf32>
    %151 = arith.addf %149, %150 : vector<8x128xf32>
    %152 = arith.negf %151 : vector<8x128xf32>
    %153 = math.exp %152 : vector<8x128xf32>
    %cst_57 = arith.constant 1.000000e+00 : f32
    %154 = vector.broadcast %cst_57 : f32 to vector<8x128xf32>
    %155 = arith.addf %154, %153 : vector<8x128xf32>
    %156 = arith.divf %154, %155 : vector<8x128xf32>
    %157 = vector.extract_strided_slice %138 {offsets = [0, 256], sizes = [8, 128], strides = [1, 1]} : vector<8x384xf32> to vector<8x128xf32>
    %158 = vector.extract_strided_slice %140 {offsets = [0, 256], sizes = [8, 128], strides = [1, 1]} : vector<8x384xf32> to vector<8x128xf32>
    %159 = vector.broadcast %14 : vector<1x128xf32> to vector<8x128xf32>
    %160 = arith.addf %158, %159 : vector<8x128xf32>
    %161 = arith.mulf %148, %160 : vector<8x128xf32>
    %162 = arith.addf %157, %161 : vector<8x128xf32>
    %163 = math.tanh %162 : vector<8x128xf32>
    %cst_58 = arith.constant 1.000000e+00 : f32
    %164 = vector.broadcast %cst_58 : f32 to vector<8x128xf32>
    %165 = arith.subf %164, %156 : vector<8x128xf32>
    %166 = arith.mulf %165, %163 : vector<8x128xf32>
    %167 = arith.mulf %156, %135 : vector<8x128xf32>
    %168 = arith.addf %166, %167 : vector<8x128xf32>
    %c0_59 = arith.constant 0 : index
    %c0_60 = arith.constant 0 : index
    %169 = vector.load %arg10[%c0_59, %c0_60] : memref<8x128xf32, #tpu.memory_space<vmem>>, vector<8x128xf32>
    tpu.vector_store %arg10[%c0_59, %c0_60], %168 {strides = array<i32>} : memref<8x128xf32, #tpu.memory_space<vmem>>, vector<8x128xf32>,
    %170 = arith.truncf %168 : vector<8x128xf32> to vector<8x128xbf16>
    %171 = arith.index_cast %c3_i32 : i32 to index
    %c0_61 = arith.constant 0 : index
    %c0_62 = arith.constant 0 : index
    %172 = vector.load %arg8[%171, %c0_61, %c0_62] : memref<8x8x128xbf16, #tpu.memory_space<vmem>>, vector<1x8x128xbf16>
    %173 = vector.shape_cast %172 : vector<1x8x128xbf16> to vector<8x128xbf16>
    %174 = vector.shape_cast %170 : vector<8x128xbf16> to vector<1x8x128xbf16>
    tpu.vector_store %arg8[%171, %c0_61, %c0_62], %174 {strides = array<i32>} : memref<8x8x128xbf16, #tpu.memory_space<vmem>>, vector<1x8x128xbf16>,
    %c4_i32 = arith.constant 4 : i32
    %c0_63 = arith.constant 0 : index
    %c0_64 = arith.constant 0 : index
    %175 = vector.load %arg10[%c0_63, %c0_64] : memref<8x128xf32, #tpu.memory_space<vmem>>, vector<8x128xf32>
    %176 = arith.index_cast %c4_i32 : i32 to index
    %c0_65 = arith.constant 0 : index
    %c0_66 = arith.constant 0 : index
    %177 = vector.load %arg11[%176, %c0_65, %c0_66] : memref<8x8x384xf32, #tpu.memory_space<vmem>>, vector<1x8x384xf32>
    %178 = vector.shape_cast %177 : vector<1x8x384xf32> to vector<8x384xf32>
    %179 = arith.truncf %175 : vector<8x128xf32> to vector<8x128xbf16>
    %cst_67 = arith.constant dense<0.000000e+00> : vector<8x384xf32>
    %180 = tpu.matmul %179, %13, %cst_67 {dimension_numbers = #tpu.dot_dimension_numbers<[1], [0], [0], [1], [0, 0, 1, 1], [], []>} : vector<8x128xbf16>, vector<128x384xbf16>, vector<8x384xf32> -> vector<8x384xf32>
    %181 = vector.extract_strided_slice %178 {offsets = [0, 0], sizes = [8, 128], strides = [1, 1]} : vector<8x384xf32> to vector<8x128xf32>
    %182 = vector.extract_strided_slice %180 {offsets = [0, 0], sizes = [8, 128], strides = [1, 1]} : vector<8x384xf32> to vector<8x128xf32>
    %183 = arith.addf %181, %182 : vector<8x128xf32>
    %184 = arith.negf %183 : vector<8x128xf32>
    %185 = math.exp %184 : vector<8x128xf32>
    %cst_68 = arith.constant 1.000000e+00 : f32
    %186 = vector.broadcast %cst_68 : f32 to vector<8x128xf32>
    %187 = arith.addf %186, %185 : vector<8x128xf32>
    %188 = arith.divf %186, %187 : vector<8x128xf32>
    %189 = vector.extract_strided_slice %178 {offsets = [0, 128], sizes = [8, 128], strides = [1, 1]} : vector<8x384xf32> to vector<8x128xf32>
    %190 = vector.extract_strided_slice %180 {offsets = [0, 128], sizes = [8, 128], strides = [1, 1]} : vector<8x384xf32> to vector<8x128xf32>
    %191 = arith.addf %189, %190 : vector<8x128xf32>
    %192 = arith.negf %191 : vector<8x128xf32>
    %193 = math.exp %192 : vector<8x128xf32>
    %cst_69 = arith.constant 1.000000e+00 : f32
    %194 = vector.broadcast %cst_69 : f32 to vector<8x128xf32>
    %195 = arith.addf %194, %193 : vector<8x128xf32>
    %196 = arith.divf %194, %195 : vector<8x128xf32>
    %197 = vector.extract_strided_slice %178 {offsets = [0, 256], sizes = [8, 128], strides = [1, 1]} : vector<8x384xf32> to vector<8x128xf32>
    %198 = vector.extract_strided_slice %180 {offsets = [0, 256], sizes = [8, 128], strides = [1, 1]} : vector<8x384xf32> to vector<8x128xf32>
    %199 = vector.broadcast %14 : vector<1x128xf32> to vector<8x128xf32>
    %200 = arith.addf %198, %199 : vector<8x128xf32>
    %201 = arith.mulf %188, %200 : vector<8x128xf32>
    %202 = arith.addf %197, %201 : vector<8x128xf32>
    %203 = math.tanh %202 : vector<8x128xf32>
    %cst_70 = arith.constant 1.000000e+00 : f32
    %204 = vector.broadcast %cst_70 : f32 to vector<8x128xf32>
    %205 = arith.subf %204, %196 : vector<8x128xf32>
    %206 = arith.mulf %205, %203 : vector<8x128xf32>
    %207 = arith.mulf %196, %175 : vector<8x128xf32>
    %208 = arith.addf %206, %207 : vector<8x128xf32>
    %c0_71 = arith.constant 0 : index
    %c0_72 = arith.constant 0 : index
    %209 = vector.load %arg10[%c0_71, %c0_72] : memref<8x128xf32, #tpu.memory_space<vmem>>, vector<8x128xf32>
    tpu.vector_store %arg10[%c0_71, %c0_72], %208 {strides = array<i32>} : memref<8x128xf32, #tpu.memory_space<vmem>>, vector<8x128xf32>,
    %210 = arith.truncf %208 : vector<8x128xf32> to vector<8x128xbf16>
    %211 = arith.index_cast %c4_i32 : i32 to index
    %c0_73 = arith.constant 0 : index
    %c0_74 = arith.constant 0 : index
    %212 = vector.load %arg8[%211, %c0_73, %c0_74] : memref<8x8x128xbf16, #tpu.memory_space<vmem>>, vector<1x8x128xbf16>
    %213 = vector.shape_cast %212 : vector<1x8x128xbf16> to vector<8x128xbf16>
    %214 = vector.shape_cast %210 : vector<8x128xbf16> to vector<1x8x128xbf16>
    tpu.vector_store %arg8[%211, %c0_73, %c0_74], %214 {strides = array<i32>} : memref<8x8x128xbf16, #tpu.memory_space<vmem>>, vector<1x8x128xbf16>,
    %c5_i32 = arith.constant 5 : i32
    %c0_75 = arith.constant 0 : index
    %c0_76 = arith.constant 0 : index
    %215 = vector.load %arg10[%c0_75, %c0_76] : memref<8x128xf32, #tpu.memory_space<vmem>>, vector<8x128xf32>
    %216 = arith.index_cast %c5_i32 : i32 to index
    %c0_77 = arith.constant 0 : index
    %c0_78 = arith.constant 0 : index
    %217 = vector.load %arg11[%216, %c0_77, %c0_78] : memref<8x8x384xf32, #tpu.memory_space<vmem>>, vector<1x8x384xf32>
    %218 = vector.shape_cast %217 : vector<1x8x384xf32> to vector<8x384xf32>
    %219 = arith.truncf %215 : vector<8x128xf32> to vector<8x128xbf16>
    %cst_79 = arith.constant dense<0.000000e+00> : vector<8x384xf32>
    %220 = tpu.matmul %219, %13, %cst_79 {dimension_numbers = #tpu.dot_dimension_numbers<[1], [0], [0], [1], [0, 0, 1, 1], [], []>} : vector<8x128xbf16>, vector<128x384xbf16>, vector<8x384xf32> -> vector<8x384xf32>
    %221 = vector.extract_strided_slice %218 {offsets = [0, 0], sizes = [8, 128], strides = [1, 1]} : vector<8x384xf32> to vector<8x128xf32>
    %222 = vector.extract_strided_slice %220 {offsets = [0, 0], sizes = [8, 128], strides = [1, 1]} : vector<8x384xf32> to vector<8x128xf32>
    %223 = arith.addf %221, %222 : vector<8x128xf32>
    %224 = arith.negf %223 : vector<8x128xf32>
    %225 = math.exp %224 : vector<8x128xf32>
    %cst_80 = arith.constant 1.000000e+00 : f32
    %226 = vector.broadcast %cst_80 : f32 to vector<8x128xf32>
    %227 = arith.addf %226, %225 : vector<8x128xf32>
    %228 = arith.divf %226, %227 : vector<8x128xf32>
    %229 = vector.extract_strided_slice %218 {offsets = [0, 128], sizes = [8, 128], strides = [1, 1]} : vector<8x384xf32> to vector<8x128xf32>
    %230 = vector.extract_strided_slice %220 {offsets = [0, 128], sizes = [8, 128], strides = [1, 1]} : vector<8x384xf32> to vector<8x128xf32>
    %231 = arith.addf %229, %230 : vector<8x128xf32>
    %232 = arith.negf %231 : vector<8x128xf32>
    %233 = math.exp %232 : vector<8x128xf32>
    %cst_81 = arith.constant 1.000000e+00 : f32
    %234 = vector.broadcast %cst_81 : f32 to vector<8x128xf32>
    %235 = arith.addf %234, %233 : vector<8x128xf32>
    %236 = arith.divf %234, %235 : vector<8x128xf32>
    %237 = vector.extract_strided_slice %218 {offsets = [0, 256], sizes = [8, 128], strides = [1, 1]} : vector<8x384xf32> to vector<8x128xf32>
    %238 = vector.extract_strided_slice %220 {offsets = [0, 256], sizes = [8, 128], strides = [1, 1]} : vector<8x384xf32> to vector<8x128xf32>
    %239 = vector.broadcast %14 : vector<1x128xf32> to vector<8x128xf32>
    %240 = arith.addf %238, %239 : vector<8x128xf32>
    %241 = arith.mulf %228, %240 : vector<8x128xf32>
    %242 = arith.addf %237, %241 : vector<8x128xf32>
    %243 = math.tanh %242 : vector<8x128xf32>
    %cst_82 = arith.constant 1.000000e+00 : f32
    %244 = vector.broadcast %cst_82 : f32 to vector<8x128xf32>
    %245 = arith.subf %244, %236 : vector<8x128xf32>
    %246 = arith.mulf %245, %243 : vector<8x128xf32>
    %247 = arith.mulf %236, %215 : vector<8x128xf32>
    %248 = arith.addf %246, %247 : vector<8x128xf32>
    %c0_83 = arith.constant 0 : index
    %c0_84 = arith.constant 0 : index
    %249 = vector.load %arg10[%c0_83, %c0_84] : memref<8x128xf32, #tpu.memory_space<vmem>>, vector<8x128xf32>
    tpu.vector_store %arg10[%c0_83, %c0_84], %248 {strides = array<i32>} : memref<8x128xf32, #tpu.memory_space<vmem>>, vector<8x128xf32>,
    %250 = arith.truncf %248 : vector<8x128xf32> to vector<8x128xbf16>
    %251 = arith.index_cast %c5_i32 : i32 to index
    %c0_85 = arith.constant 0 : index
    %c0_86 = arith.constant 0 : index
    %252 = vector.load %arg8[%251, %c0_85, %c0_86] : memref<8x8x128xbf16, #tpu.memory_space<vmem>>, vector<1x8x128xbf16>
    %253 = vector.shape_cast %252 : vector<1x8x128xbf16> to vector<8x128xbf16>
    %254 = vector.shape_cast %250 : vector<8x128xbf16> to vector<1x8x128xbf16>
    tpu.vector_store %arg8[%251, %c0_85, %c0_86], %254 {strides = array<i32>} : memref<8x8x128xbf16, #tpu.memory_space<vmem>>, vector<1x8x128xbf16>,
    %c6_i32 = arith.constant 6 : i32
    %c0_87 = arith.constant 0 : index
    %c0_88 = arith.constant 0 : index
    %255 = vector.load %arg10[%c0_87, %c0_88] : memref<8x128xf32, #tpu.memory_space<vmem>>, vector<8x128xf32>
    %256 = arith.index_cast %c6_i32 : i32 to index
    %c0_89 = arith.constant 0 : index
    %c0_90 = arith.constant 0 : index
    %257 = vector.load %arg11[%256, %c0_89, %c0_90] : memref<8x8x384xf32, #tpu.memory_space<vmem>>, vector<1x8x384xf32>
    %258 = vector.shape_cast %257 : vector<1x8x384xf32> to vector<8x384xf32>
    %259 = arith.truncf %255 : vector<8x128xf32> to vector<8x128xbf16>
    %cst_91 = arith.constant dense<0.000000e+00> : vector<8x384xf32>
    %260 = tpu.matmul %259, %13, %cst_91 {dimension_numbers = #tpu.dot_dimension_numbers<[1], [0], [0], [1], [0, 0, 1, 1], [], []>} : vector<8x128xbf16>, vector<128x384xbf16>, vector<8x384xf32> -> vector<8x384xf32>
    %261 = vector.extract_strided_slice %258 {offsets = [0, 0], sizes = [8, 128], strides = [1, 1]} : vector<8x384xf32> to vector<8x128xf32>
    %262 = vector.extract_strided_slice %260 {offsets = [0, 0], sizes = [8, 128], strides = [1, 1]} : vector<8x384xf32> to vector<8x128xf32>
    %263 = arith.addf %261, %262 : vector<8x128xf32>
    %264 = arith.negf %263 : vector<8x128xf32>
    %265 = math.exp %264 : vector<8x128xf32>
    %cst_92 = arith.constant 1.000000e+00 : f32
    %266 = vector.broadcast %cst_92 : f32 to vector<8x128xf32>
    %267 = arith.addf %266, %265 : vector<8x128xf32>
    %268 = arith.divf %266, %267 : vector<8x128xf32>
    %269 = vector.extract_strided_slice %258 {offsets = [0, 128], sizes = [8, 128], strides = [1, 1]} : vector<8x384xf32> to vector<8x128xf32>
    %270 = vector.extract_strided_slice %260 {offsets = [0, 128], sizes = [8, 128], strides = [1, 1]} : vector<8x384xf32> to vector<8x128xf32>
    %271 = arith.addf %269, %270 : vector<8x128xf32>
    %272 = arith.negf %271 : vector<8x128xf32>
    %273 = math.exp %272 : vector<8x128xf32>
    %cst_93 = arith.constant 1.000000e+00 : f32
    %274 = vector.broadcast %cst_93 : f32 to vector<8x128xf32>
    %275 = arith.addf %274, %273 : vector<8x128xf32>
    %276 = arith.divf %274, %275 : vector<8x128xf32>
    %277 = vector.extract_strided_slice %258 {offsets = [0, 256], sizes = [8, 128], strides = [1, 1]} : vector<8x384xf32> to vector<8x128xf32>
    %278 = vector.extract_strided_slice %260 {offsets = [0, 256], sizes = [8, 128], strides = [1, 1]} : vector<8x384xf32> to vector<8x128xf32>
    %279 = vector.broadcast %14 : vector<1x128xf32> to vector<8x128xf32>
    %280 = arith.addf %278, %279 : vector<8x128xf32>
    %281 = arith.mulf %268, %280 : vector<8x128xf32>
    %282 = arith.addf %277, %281 : vector<8x128xf32>
    %283 = math.tanh %282 : vector<8x128xf32>
    %cst_94 = arith.constant 1.000000e+00 : f32
    %284 = vector.broadcast %cst_94 : f32 to vector<8x128xf32>
    %285 = arith.subf %284, %276 : vector<8x128xf32>
    %286 = arith.mulf %285, %283 : vector<8x128xf32>
    %287 = arith.mulf %276, %255 : vector<8x128xf32>
    %288 = arith.addf %286, %287 : vector<8x128xf32>
    %c0_95 = arith.constant 0 : index
    %c0_96 = arith.constant 0 : index
    %289 = vector.load %arg10[%c0_95, %c0_96] : memref<8x128xf32, #tpu.memory_space<vmem>>, vector<8x128xf32>
    tpu.vector_store %arg10[%c0_95, %c0_96], %288 {strides = array<i32>} : memref<8x128xf32, #tpu.memory_space<vmem>>, vector<8x128xf32>,
    %290 = arith.truncf %288 : vector<8x128xf32> to vector<8x128xbf16>
    %291 = arith.index_cast %c6_i32 : i32 to index
    %c0_97 = arith.constant 0 : index
    %c0_98 = arith.constant 0 : index
    %292 = vector.load %arg8[%291, %c0_97, %c0_98] : memref<8x8x128xbf16, #tpu.memory_space<vmem>>, vector<1x8x128xbf16>
    %293 = vector.shape_cast %292 : vector<1x8x128xbf16> to vector<8x128xbf16>
    %294 = vector.shape_cast %290 : vector<8x128xbf16> to vector<1x8x128xbf16>
    tpu.vector_store %arg8[%291, %c0_97, %c0_98], %294 {strides = array<i32>} : memref<8x8x128xbf16, #tpu.memory_space<vmem>>, vector<1x8x128xbf16>,
    %c7_i32 = arith.constant 7 : i32
    %c0_99 = arith.constant 0 : index
    %c0_100 = arith.constant 0 : index
    %295 = vector.load %arg10[%c0_99, %c0_100] : memref<8x128xf32, #tpu.memory_space<vmem>>, vector<8x128xf32>
    %296 = arith.index_cast %c7_i32 : i32 to index
    %c0_101 = arith.constant 0 : index
    %c0_102 = arith.constant 0 : index
    %297 = vector.load %arg11[%296, %c0_101, %c0_102] : memref<8x8x384xf32, #tpu.memory_space<vmem>>, vector<1x8x384xf32>
    %298 = vector.shape_cast %297 : vector<1x8x384xf32> to vector<8x384xf32>
    %299 = arith.truncf %295 : vector<8x128xf32> to vector<8x128xbf16>
    %cst_103 = arith.constant dense<0.000000e+00> : vector<8x384xf32>
    %300 = tpu.matmul %299, %13, %cst_103 {dimension_numbers = #tpu.dot_dimension_numbers<[1], [0], [0], [1], [0, 0, 1, 1], [], []>} : vector<8x128xbf16>, vector<128x384xbf16>, vector<8x384xf32> -> vector<8x384xf32>
    %301 = vector.extract_strided_slice %298 {offsets = [0, 0], sizes = [8, 128], strides = [1, 1]} : vector<8x384xf32> to vector<8x128xf32>
    %302 = vector.extract_strided_slice %300 {offsets = [0, 0], sizes = [8, 128], strides = [1, 1]} : vector<8x384xf32> to vector<8x128xf32>
    %303 = arith.addf %301, %302 : vector<8x128xf32>
    %304 = arith.negf %303 : vector<8x128xf32>
    %305 = math.exp %304 : vector<8x128xf32>
    %cst_104 = arith.constant 1.000000e+00 : f32
    %306 = vector.broadcast %cst_104 : f32 to vector<8x128xf32>
    %307 = arith.addf %306, %305 : vector<8x128xf32>
    %308 = arith.divf %306, %307 : vector<8x128xf32>
    %309 = vector.extract_strided_slice %298 {offsets = [0, 128], sizes = [8, 128], strides = [1, 1]} : vector<8x384xf32> to vector<8x128xf32>
    %310 = vector.extract_strided_slice %300 {offsets = [0, 128], sizes = [8, 128], strides = [1, 1]} : vector<8x384xf32> to vector<8x128xf32>
    %311 = arith.addf %309, %310 : vector<8x128xf32>
    %312 = arith.negf %311 : vector<8x128xf32>
    %313 = math.exp %312 : vector<8x128xf32>
    %cst_105 = arith.constant 1.000000e+00 : f32
    %314 = vector.broadcast %cst_105 : f32 to vector<8x128xf32>
    %315 = arith.addf %314, %313 : vector<8x128xf32>
    %316 = arith.divf %314, %315 : vector<8x128xf32>
    %317 = vector.extract_strided_slice %298 {offsets = [0, 256], sizes = [8, 128], strides = [1, 1]} : vector<8x384xf32> to vector<8x128xf32>
    %318 = vector.extract_strided_slice %300 {offsets = [0, 256], sizes = [8, 128], strides = [1, 1]} : vector<8x384xf32> to vector<8x128xf32>
    %319 = vector.broadcast %14 : vector<1x128xf32> to vector<8x128xf32>
    %320 = arith.addf %318, %319 : vector<8x128xf32>
    %321 = arith.mulf %308, %320 : vector<8x128xf32>
    %322 = arith.addf %317, %321 : vector<8x128xf32>
    %323 = math.tanh %322 : vector<8x128xf32>
    %cst_106 = arith.constant 1.000000e+00 : f32
    %324 = vector.broadcast %cst_106 : f32 to vector<8x128xf32>
    %325 = arith.subf %324, %316 : vector<8x128xf32>
    %326 = arith.mulf %325, %323 : vector<8x128xf32>
    %327 = arith.mulf %316, %295 : vector<8x128xf32>
    %328 = arith.addf %326, %327 : vector<8x128xf32>
    %c0_107 = arith.constant 0 : index
    %c0_108 = arith.constant 0 : index
    %329 = vector.load %arg10[%c0_107, %c0_108] : memref<8x128xf32, #tpu.memory_space<vmem>>, vector<8x128xf32>
    tpu.vector_store %arg10[%c0_107, %c0_108], %328 {strides = array<i32>} : memref<8x128xf32, #tpu.memory_space<vmem>>, vector<8x128xf32>,
    %330 = arith.truncf %328 : vector<8x128xf32> to vector<8x128xbf16>
    %331 = arith.index_cast %c7_i32 : i32 to index
    %c0_109 = arith.constant 0 : index
    %c0_110 = arith.constant 0 : index
    %332 = vector.load %arg8[%331, %c0_109, %c0_110] : memref<8x8x128xbf16, #tpu.memory_space<vmem>>, vector<1x8x128xbf16>
    %333 = vector.shape_cast %332 : vector<1x8x128xbf16> to vector<8x128xbf16>
    %334 = vector.shape_cast %330 : vector<8x128xbf16> to vector<1x8x128xbf16>
    tpu.vector_store %arg8[%331, %c0_109, %c0_110], %334 {strides = array<i32>} : memref<8x8x128xbf16, #tpu.memory_space<vmem>>, vector<1x8x128xbf16>,
    %c8_i32 = arith.constant 8 : i32
    %c0_i32_111 = arith.constant 0 : i32
    %335 = arith.cmpi eq, %arg1, %c0_i32_111 : i32
    %336 = arith.extui %335 : i1 to i32
    %c0_i32_112 = arith.constant 0 : i32
    %337 = arith.cmpi ne, %336, %c0_i32_112 : i32
    scf.if %337 {
      %c0_113 = arith.constant 0 : index
      %c0_114 = arith.constant 0 : index
      %338 = vector.load %arg10[%c0_113, %c0_114] : memref<8x128xf32, #tpu.memory_space<vmem>>, vector<8x128xf32>
      %c0_115 = arith.constant 0 : index
      %c0_116 = arith.constant 0 : index
      %339 = vector.load %arg9[%c0_115, %c0_116] : memref<8x128xf32, #tpu.memory_space<vmem>>, vector<8x128xf32>
      tpu.vector_store %arg9[%c0_115, %c0_116], %338 {strides = array<i32>} : memref<8x128xf32, #tpu.memory_space<vmem>>, vector<8x128xf32>,
    } else {
    }
    return
  }
  func.func @transform_0(%arg0: i32, %arg1: i32) -> (i32, i32, i32) {
    %c0_i32 = arith.constant 0 : i32
    %c0_i32_0 = arith.constant 0 : i32
    return %arg1, %arg0, %c0_i32 : i32, i32, i32
  }
  func.func @transform_1(%arg0: i32, %arg1: i32) -> (i32, i32) {
    %c0_i32 = arith.constant 0 : i32
    %c0_i32_0 = arith.constant 0 : i32
    %c0_i32_1 = arith.constant 0 : i32
    return %c0_i32, %c0_i32_0 : i32, i32
  }
  func.func @transform_2(%arg0: i32, %arg1: i32) -> (i32, i32) {
    %c0_i32 = arith.constant 0 : i32
    %c0_i32_0 = arith.constant 0 : i32
    return %arg0, %c0_i32 : i32, i32
  }
  func.func @transform_3(%arg0: i32, %arg1: i32) -> (i32, i32) {
    %c0_i32 = arith.constant 0 : i32
    %c0_i32_0 = arith.constant 0 : i32
    %c0_i32_1 = arith.constant 0 : i32
    return %c0_i32, %c0_i32_0 : i32, i32
  }
  func.func @transform_4(%arg0: i32, %arg1: i32) -> (i32, i32) {
    %c0_i32 = arith.constant 0 : i32
    %c0_i32_0 = arith.constant 0 : i32
    %c0_i32_1 = arith.constant 0 : i32
    return %c0_i32, %c0_i32_0 : i32, i32
  }
  func.func @transform_5(%arg0: i32, %arg1: i32) -> (i32, i32) {
    %c0_i32 = arith.constant 0 : i32
    %c0_i32_0 = arith.constant 0 : i32
    return %arg0, %c0_i32 : i32, i32
  }
  func.func @transform_6(%arg0: i32, %arg1: i32) -> (i32, i32, i32) {
    %c0_i32 = arith.constant 0 : i32
    %c0_i32_0 = arith.constant 0 : i32
    return %arg1, %arg0, %c0_i32 : i32, i32, i32
  }
  func.func @transform_7(%arg0: i32, %arg1: i32) -> (i32, i32) {
    %c0_i32 = arith.constant 0 : i32
    %c0_i32_0 = arith.constant 0 : i32
    return %arg0, %c0_i32 : i32, i32
  }
}

</mosaic_0001>

<bundles_post_ra>
// kernel: seq2seq_decoder_forward.4
= control target key start
LH: loop header
LB: loop body
LE: loop exit
PB: predicated region body
PF: predicated region fallthrough
CT: control target
= control target key end

     0   :  { %7 = vsyncpa [#allocation3], 0  ;;  %s577_s0 = inlined_call_operand.vmem [shape: f32[8,128], index: 0, kind: input, shape index: {}]   ;;  %s578_s1 = inlined_call_operand.hbm [shape: bf16[128,384], index: 1, kind: input, shape index: {}]   ;;  %s579_s2 = inlined_call_operand.vmem [shape: f32[8,384], index: 2, kind: output, shape index: {}]  }
   0x1   :  { %9 = vsyncpa [#allocation3 + $0x1], 0  ;;  %s484_s9 = smov 0   ;;  %s486_s10 = smov 0  }
   0x2   :  { %s488_s11 = smov 0   ;;  %s490_s12 = smov 0  }
   0x3 LB: > { %s503_s13 = sadd.s32 4294967295, %s464_s12   ;;  %s506_s14 = sadd.s32 1, %s464_s12   ;;  %s464_s12 = sphi %s490_s12, %s586_s12   ;;  %s460_s11 = sphi %s488_s11, %s585_s11   ;;  %s456_s10 = sphi %s486_s10, %s584_s10   ;;  %s452_s9 = sphi %s484_s9, %s583_s9  }
   0x4   : > { %s40_s15 = ssub.s32 %s464_s12, %s506_s14  ;;  %s43_s16 = sadd.s32 1, %s460_s11 }
   0x5   : > { %p41_p0 = scmp.eq.s32.totalorder %s40_s15, 0  ;;  %p50_p1 = scmp.ne.s32.totalorder %s460_s11, %s456_s10 }
   0x6   : > { %p51_p2 = scmp.eq.s32.totalorder %s464_s12, 0  ;;  %p56_p3 = scmp.ne.s32.totalorder %s456_s10, %s452_s9 }
   0x7   : > { %s516_s17 = scalar_select %p41_p0, %s460_s11, %s43_s16  }
   0x8   : > { %p518_p4 = por %p51_p2, %p50_p1  ;;  %p57_p5 = scmp.eq.s32.totalorder %s503_s13, 0 }
   0x9   : > { %p364_p6 = scmp.lt.s32.totalorder %s464_s12, 3  ;;  %s109_s20 = sand.u32 1, %s460_s11  }
   0xa   : > { %p524_p7 = por %p57_p5, %p56_p3  ;;  %s311_s21 = sshll.u32 %s109_s20, 6 }
   0xb   : > { %s312_s22 = sshll.u32 %s464_s12, 2  ;;  %s113_s26 = scalar_lea.vmem [#allocation2], %s311_s21 }
   0xc   : > { %s117_s25 = scalar_lea.hbm %s578_s1, %s312_s22  ;;  %s120_s27 = sshll.u32 %s113_s26, 4  ;;  %s121_s27 = int_to_ptr.vmem [resolvable:$true] %s120_s27 }
   0xd   : > { %s118_s28 = sshll.u32 %s117_s25, 4  ;;  %p535_p8 = pnand %p364_p6, %p518_p4  ;;  %s119_s28 = int_to_ptr.hbm [resolvable:$true] %s118_s28 }
   0xe   : > { %s110_s30 = scalar_lea.sflag [#allocation3], %s109_s20  ;;  %s400_s3 = sshra.s32 %s119_s28, 4  ;;  %s401_s3 = int_to_ptr.hbm [resolvable:$true] %s400_s3 }
   0xf   : > { %s402_s4 = scalar_lea.hbm %s401_s3, 64  ;;  %p404_p10 = pneg %p535_p8 }
  0x10   : > { %p403_p9 = scmp.ne.s32.totalorder %s401_s3, %s402_s4  ;;  %s407_s7 = scalar_lea.hbm %s578_s1, 192 }
  0x11   : > { %p408_p13 = scmp.lt.s32.totalorder %s401_s3, %s578_s1  ;;  %p409_p0 = scmp.lt.s32.totalorder %s407_s7, %s402_s4 }
  0x12   : > { %p405_p11 = pnand %p404_p10, %p403_p9 }
  0x13   : > { %p410_p1 = por %p409_p0, %p408_p13 }
  0x14   : > { %p406_p12 = pneg %p405_p11 }
  0x16   : > { %p411_p2 = pnand %p410_p1, %p406_p12 }
  0x18   : > { %414 = shalt.err (!%p411_p2)
}
  0x19   : > { %s466_s15 = smov 192   ;;  %s467_s16 = smov 64  }
  0x1a   : > { %s468_s18 = smov 4   ;;  %p313_p3 = scmp.ge.s32.totalorder %s464_s12, 1 }
  0x1b   : > { %363 = dma.hbm_to_vmem [thread:$0]  (!%p535_p8), %s119_s28, 1024, %s121_s27, %s110_s30, %s466_s15, %s467_s16, %s468_s18  }
  0x1c   : > { %p128_p4 = scmp.lt.s32.totalorder %s464_s12, 4 }
  0x1e   : > { %p129_p5 = pnand %p313_p3, %p128_p4 }
  0x1f   : > { %s134_s20 = sand.u32 (!%p129_p5), 1, %s456_s10  }
  0x20   : > { %132 = sbr.rel (%p129_p5) target bundleno = 204 (0xcc), region = 28  ;;  %s314_s21 = sshll.u32 (!%p129_p5), %s134_s20, 6 }
  0x21   : > { %s135_s22 = scalar_lea.sflag (!%p129_p5), [#allocation3], %s134_s20  ;;  %s138_s23 = scalar_lea.vmem (!%p129_p5), [#allocation2], %s314_s21 }
  0x25   : > { %447 = dma.done.wait (%p524_p7), %s135_s22, 1024  }
  0x26   : > { %449 = vsyncadd (%p524_p7), %s135_s22, 4294966272  ;;  %v357_v0 = vld [vmem:[%s138_s23 + $0x38] sm:$0xff]  ;;  %v356_v1 = vld [vmem:[%s138_s23 + $0x30] sm:$0xff]  ;;  %p159_p6 = scmp.lt.s32.totalorder %s503_s13, 2 }
  0x27   : > { %229 = vmatpush.bf16.msra.mxu0 %v357_v0  ;;  %v355_v2 = vld [vmem:[%s138_s23 + $0x28] sm:$0xff]  ;;  %v354_v3 = vld [vmem:[%s138_s23 + $0x20] sm:$0xff]  ;;  %v353_v4 = vld [vmem:[%s138_s23 + $0x18] sm:$0xff] }
  0x28   : > { %v352_v5 = vld [vmem:[%s138_s23 + $0x10] sm:$0xff]  ;;  %v351_v6 = vld [vmem:[%s138_s23 + $0x8] sm:$0xff]  ;;  %v350_v7 = vld [vmem:[%s138_s23] sm:$0xff]  ;;  %s588_s13 = smov (!%p159_p6, %s503_s13), 2 }
  0x29   : > { %v163_v8 = vld [vmem:[%s577_s0] sm:$0xff]  ;;  %s315_s24 = sshll.u32 %s588_s13, 3 }
  0x2a   : > { %v164_v9 = vpack.c.bf16 %v163_v8, %v163_v8  ;;  %s162_s27 = scalar_lea.vmem %s579_s2, %s315_s24 }
  0x2b   : > { %230 = vmatpush.bf16.msra.mxu0 %v356_v1 }
  0x2f   : > { %231 = vmatpush.bf16.msra.mxu0 %v355_v2 }
  0x33   : > { %232 = vmatpush.bf16.msra.mxu0 %v354_v3 }
  0x37   : > { %233 = vmatpush.bf16.msra.mxu0 %v353_v4 }
  0x3b   : > { %234 = vmatpush.bf16.msra.mxu0 %v352_v5 }
  0x3f   : > { %235 = vmatpush.bf16.msra.mxu0 %v351_v6 }
  0x43   : > { %236 = vmatpush.bf16.msra.mxu0 %v350_v7 }
  0x46   : > { %237 = vmatmul.bf16.vlgmr.msra.gmra.mxu0 %v164_v9 }
  0xc3   : > { %v238_v10 = vpop.f32.mrf.mxu0 }
  0xc4   : > { %242 = vst [vmem:[%s162_s27] sm:$0xff] %v238_v10 }
  0xcb   : > { %v240_v11 = vpop.f32.mrf.mxu0 }
  0xcc PF: > { %p12_p7 = scmp.ge.s32.totalorder %s506_s14, 5   ;;  %s583_s9 = smov %s456_s10 }
  0xcd   : > { %s584_s10 = smov %s460_s11  ;;  %s585_s11 = smov %s516_s17 }
  0xce   : > { %s586_s12 = smov %s506_s14  ;;  %14 = sbr.rel (!%p12_p7) target bundleno = 3 (0x3), region = 68 }
  0xd3   :  { %262 = vsyncpa [#allocation3], 1 }
  0xd4   :  { %264 = vsyncpa [#allocation3 + $0x1], 1 }

// kernel: seq2seq_decoder_forward.7
= control target key start
LH: loop header
LB: loop body
LE: loop exit
PB: predicated region body
PF: predicated region fallthrough
CT: control target
= control target key end

     0   :  { %s705_s1 = inlined_call_operand.vmem [shape: bf16[128,128], index: 1, kind: input, shape index: {}]   ;;  %s706_s2 = inlined_call_operand.vmem [shape: f32[1,128], index: 2, kind: input, shape index: {}]   ;;  %s707_s0 = inlined_call_operand.vmem [shape: bf16[256,128], index: 0, kind: input, shape index: {}]   ;;  %s708_s3 = inlined_call_operand.vmem [shape: f32[256,128], index: 3, kind: output, shape index: {}]  }
   0x1   :  { %v454_v0 = vld [vmem:[%s705_s1 + $0x38] sm:$0xff]  ;;  %v453_v1 = vld [vmem:[%s705_s1 + $0x30] sm:$0xff]  ;;  %v452_v2 = vld [vmem:[%s705_s1 + $0x28] sm:$0xff] }
   0x2   :  { %210 = vmatpush.bf16.msra.mxu0 %v454_v0  ;;  %455 = vmatpush.bf16.msra.mxu1 %v454_v0  ;;  %v451_v3 = vld [vmem:[%s705_s1 + $0x20] sm:$0xff]  ;;  %v450_v4 = vld [vmem:[%s705_s1 + $0x18] sm:$0xff]  ;;  %v449_v5 = vld [vmem:[%s705_s1 + $0x10] sm:$0xff] }
   0x3   :  { %456 = vmatpush.bf16.msra.mxu2 %v454_v0  ;;  %457 = vmatpush.bf16.msra.mxu3 %v454_v0  ;;  %v448_v6 = vld [vmem:[%s705_s1 + $0x8] sm:$0xff]  ;;  %v447_v7 = vld [vmem:[%s705_s1] sm:$0xff]  ;;  %v433_v16 = vld [vmem:[%s707_s0 + $0x10] sm:$0xff] }
   0x4   :  { %v431_v8 = vld [vmem:[%s707_s0] sm:$0xff]  ;;  %v432_v12 = vld [vmem:[%s707_s0 + $0x8] sm:$0xff]  ;;  %v437_v17 = vld [vmem:[%s707_s0 + $0x30] sm:$0xff] }
   0x5   :  { %v435_v9 = vld [vmem:[%s707_s0 + $0x20] sm:$0xff]  ;;  %v436_v13 = vld [vmem:[%s707_s0 + $0x28] sm:$0xff]  ;;  %v441_v18 = vld [vmem:[%s707_s0 + $0x50] sm:$0xff] }
   0x6   :  { %211 = vmatpush.bf16.msra.mxu0 %v453_v1  ;;  %458 = vmatpush.bf16.msra.mxu1 %v453_v1  ;;  %v439_v10 = vld [vmem:[%s707_s0 + $0x40] sm:$0xff]  ;;  %v440_v14 = vld [vmem:[%s707_s0 + $0x48] sm:$0xff]  ;;  %v445_v19 = vld [vmem:[%s707_s0 + $0x70] sm:$0xff] }
   0x7   :  { %459 = vmatpush.bf16.msra.mxu2 %v453_v1  ;;  %460 = vmatpush.bf16.msra.mxu3 %v453_v1  ;;  %v443_v11 = vld [vmem:[%s707_s0 + $0x60] sm:$0xff]  ;;  %v444_v15 = vld [vmem:[%s707_s0 + $0x68] sm:$0xff]  ;;  %v434_v20 = vld [vmem:[%s707_s0 + $0x18] sm:$0xff] }
   0x8   :  { %v438_v21 = vld [vmem:[%s707_s0 + $0x38] sm:$0xff]  ;;  %v575_v24 = vld [vmem:[%s706_s2] ss:$0 sm:$0xff] }
   0x9   :  { %v442_v22 = vld [vmem:[%s707_s0 + $0x58] sm:$0xff] }
   0xa   :  { %212 = vmatpush.bf16.msra.mxu0 %v452_v2  ;;  %461 = vmatpush.bf16.msra.mxu1 %v452_v2  ;;  %v446_v23 = vld [vmem:[%s707_s0 + $0x78] sm:$0xff] }
   0xb   :  { %462 = vmatpush.bf16.msra.mxu2 %v452_v2  ;;  %463 = vmatpush.bf16.msra.mxu3 %v452_v2 }
   0xe   :  { %213 = vmatpush.bf16.msra.mxu0 %v451_v3  ;;  %464 = vmatpush.bf16.msra.mxu1 %v451_v3 }
   0xf   :  { %465 = vmatpush.bf16.msra.mxu2 %v451_v3  ;;  %466 = vmatpush.bf16.msra.mxu3 %v451_v3 }
  0x12   :  { %214 = vmatpush.bf16.msra.mxu0 %v450_v4  ;;  %467 = vmatpush.bf16.msra.mxu1 %v450_v4 }
  0x13   :  { %468 = vmatpush.bf16.msra.mxu2 %v450_v4  ;;  %469 = vmatpush.bf16.msra.mxu3 %v450_v4 }
  0x16   :  { %215 = vmatpush.bf16.msra.mxu0 %v449_v5  ;;  %470 = vmatpush.bf16.msra.mxu1 %v449_v5 }
  0x17   :  { %471 = vmatpush.bf16.msra.mxu2 %v449_v5  ;;  %472 = vmatpush.bf16.msra.mxu3 %v449_v5 }
  0x1a   :  { %216 = vmatpush.bf16.msra.mxu0 %v448_v6  ;;  %473 = vmatpush.bf16.msra.mxu1 %v448_v6 }
  0x1b   :  { %474 = vmatpush.bf16.msra.mxu2 %v448_v6  ;;  %475 = vmatpush.bf16.msra.mxu3 %v448_v6 }
  0x1e   :  { %217 = vmatpush.bf16.msra.mxu0 %v447_v7  ;;  %476 = vmatpush.bf16.msra.mxu1 %v447_v7 }
  0x1f   :  { %477 = vmatpush.bf16.msra.mxu2 %v447_v7  ;;  %478 = vmatpush.bf16.msra.mxu3 %v447_v7 }
  0x21   :  { %218 = vmatmul.bf16.vlgmr.msra.gmra.mxu0 %v431_v8  ;;  %238 = vmatmul.bf16.vlgmr.msra.gmra.mxu1 %v435_v9 }
  0x22   :  { %258 = vmatmul.bf16.vlgmr.msra.gmra.mxu2 %v439_v10  ;;  %278 = vmatmul.bf16.vlgmr.msra.gmra.mxu3 %v443_v11 }
  0x31   :  { %223 = vmatmul.bf16.gmra.mxu0 %v432_v12  ;;  %243 = vmatmul.bf16.gmra.mxu1 %v436_v13 }
  0x32   :  { %263 = vmatmul.bf16.gmra.mxu2 %v440_v14  ;;  %283 = vmatmul.bf16.gmra.mxu3 %v444_v15 }
  0x41   :  { %228 = vmatmul.bf16.gmra.mxu0 %v433_v16  ;;  %248 = vmatmul.bf16.gmra.mxu1 %v437_v17 }
  0x42   :  { %268 = vmatmul.bf16.gmra.mxu2 %v441_v18  ;;  %288 = vmatmul.bf16.gmra.mxu3 %v445_v19 }
  0x51   :  { %233 = vmatmul.bf16.gmra.mxu0 %v434_v20  ;;  %253 = vmatmul.bf16.gmra.mxu1 %v438_v21 }
  0x52   :  { %273 = vmatmul.bf16.gmra.mxu2 %v442_v22  ;;  %293 = vmatmul.bf16.gmra.mxu3 %v446_v23 }
  0x9e   :  { %v219_v25 = vpop.f32.mrf.mxu0  ;;  %v239_v26 = vpop.f32.mrf.mxu1 }
  0x9f   :  { %v220_v27 = vadd.f32 %v575_v24, %v219_v25  ;;  %v240_v28 = vadd.f32 %v575_v24, %v239_v26 }
  0xa1   :  { %299 = vst [vmem:[%s708_s3] sm:$0xff] %v220_v27 }
  0xa2   :  { %307 = vst [vmem:[%s708_s3 + $0x40] sm:$0xff] %v240_v28 }
  0xa5   :  { %v259_v29 = vpop.f32.mrf.mxu2  ;;  %v279_v30 = vpop.f32.mrf.mxu3 }
  0xa6   :  { %v260_v31 = vadd.f32 %v575_v24, %v259_v29  ;;  %v280_v32 = vadd.f32 %v575_v24, %v279_v30  ;;  %v221_v33 = vpop.f32.mrf.mxu0  ;;  %v241_v34 = vpop.f32.mrf.mxu1 }
  0xa7   :  { %v222_v35 = vadd.f32 %v575_v24, %v221_v33  ;;  %v242_v36 = vadd.f32 %v575_v24, %v241_v34 }
  0xa8   :  { %315 = vst [vmem:[%s708_s3 + $0x80] sm:$0xff] %v260_v31 }
  0xa9   :  { %323 = vst [vmem:[%s708_s3 + $0xc0] sm:$0xff] %v280_v32 }
  0xaa   :  { %300 = vst [vmem:[%s708_s3 + $0x8] sm:$0xff] %v222_v35 }
  0xab   :  { %308 = vst [vmem:[%s708_s3 + $0x48] sm:$0xff] %v242_v36 }
  0xad   :  { %v261_v37 = vpop.f32.mrf.mxu2  ;;  %v281_v38 = vpop.f32.mrf.mxu3 }
  0xae   :  { %v262_v39 = vadd.f32 %v575_v24, %v261_v37  ;;  %v282_v40 = vadd.f32 %v575_v24, %v281_v38  ;;  %v224_v41 = vpop.f32.mrf.mxu0  ;;  %v244_v42 = vpop.f32.mrf.mxu1 }
  0xaf   :  { %v225_v43 = vadd.f32 %v575_v24, %v224_v41  ;;  %v245_v44 = vadd.f32 %v575_v24, %v244_v42 }
  0xb0   :  { %316 = vst [vmem:[%s708_s3 + $0x88] sm:$0xff] %v262_v39 }
  0xb1   :  { %324 = vst [vmem:[%s708_s3 + $0xc8] sm:$0xff] %v282_v40 }
  0xb2   :  { %301 = vst [vmem:[%s708_s3 + $0x10] sm:$0xff] %v225_v43 }
  0xb3   :  { %309 = vst [vmem:[%s708_s3 + $0x50] sm:$0xff] %v245_v44 }
  0xb5   :  { %v264_v45 = vpop.f32.mrf.mxu2  ;;  %v284_v46 = vpop.f32.mrf.mxu3 }
  0xb6   :  { %v265_v47 = vadd.f32 %v575_v24, %v264_v45  ;;  %v285_v48 = vadd.f32 %v575_v24, %v284_v46  ;;  %v226_v49 = vpop.f32.mrf.mxu0  ;;  %v246_v50 = vpop.f32.mrf.mxu1 }
  0xb7   :  { %v227_v51 = vadd.f32 %v575_v24, %v226_v49  ;;  %v247_v52 = vadd.f32 %v575_v24, %v246_v50 }
  0xb8   :  { %317 = vst [vmem:[%s708_s3 + $0x90] sm:$0xff] %v265_v47 }
  0xb9   :  { %325 = vst [vmem:[%s708_s3 + $0xd0] sm:$0xff] %v285_v48 }
  0xba   :  { %302 = vst [vmem:[%s708_s3 + $0x18] sm:$0xff] %v227_v51 }
  0xbb   :  { %310 = vst [vmem:[%s708_s3 + $0x58] sm:$0xff] %v247_v52 }
  0xbd   :  { %v266_v53 = vpop.f32.mrf.mxu2  ;;  %v286_v54 = vpop.f32.mrf.mxu3 }
  0xbe   :  { %v267_v55 = vadd.f32 %v575_v24, %v266_v53  ;;  %v287_v56 = vadd.f32 %v575_v24, %v286_v54  ;;  %v229_v57 = vpop.f32.mrf.mxu0  ;;  %v249_v58 = vpop.f32.mrf.mxu1 }
  0xbf   :  { %v230_v59 = vadd.f32 %v575_v24, %v229_v57  ;;  %v250_v60 = vadd.f32 %v575_v24, %v249_v58 }
  0xc0   :  { %318 = vst [vmem:[%s708_s3 + $0x98] sm:$0xff] %v267_v55 }
  0xc1   :  { %326 = vst [vmem:[%s708_s3 + $0xd8] sm:$0xff] %v287_v56 }
  0xc2   :  { %303 = vst [vmem:[%s708_s3 + $0x20] sm:$0xff] %v230_v59 }
  0xc3   :  { %311 = vst [vmem:[%s708_s3 + $0x60] sm:$0xff] %v250_v60 }
  0xc5   :  { %v269_v61 = vpop.f32.mrf.mxu2  ;;  %v289_v62 = vpop.f32.mrf.mxu3 }
  0xc6   :  { %v270_v63 = vadd.f32 %v575_v24, %v269_v61  ;;  %v290_v0 = vadd.f32 %v575_v24, %v289_v62  ;;  %v231_v1 = vpop.f32.mrf.mxu0  ;;  %v251_v2 = vpop.f32.mrf.mxu1 }
  0xc7   :  { %v232_v3 = vadd.f32 %v575_v24, %v231_v1  ;;  %v252_v4 = vadd.f32 %v575_v24, %v251_v2 }
  0xc8   :  { %319 = vst [vmem:[%s708_s3 + $0xa0] sm:$0xff] %v270_v63 }
  0xc9   :  { %327 = vst [vmem:[%s708_s3 + $0xe0] sm:$0xff] %v290_v0 }
  0xca   :  { %304 = vst [vmem:[%s708_s3 + $0x28] sm:$0xff] %v232_v3 }
  0xcb   :  { %312 = vst [vmem:[%s708_s3 + $0x68] sm:$0xff] %v252_v4 }
  0xcd   :  { %v271_v5 = vpop.f32.mrf.mxu2  ;;  %v291_v6 = vpop.f32.mrf.mxu3 }
  0xce   :  { %v272_v7 = vadd.f32 %v575_v24, %v271_v5  ;;  %v292_v8 = vadd.f32 %v575_v24, %v291_v6  ;;  %v234_v9 = vpop.f32.mrf.mxu0  ;;  %v254_v10 = vpop.f32.mrf.mxu1 }
  0xcf   :  { %v235_v11 = vadd.f32 %v575_v24, %v234_v9  ;;  %v255_v12 = vadd.f32 %v575_v24, %v254_v10 }
  0xd0   :  { %320 = vst [vmem:[%s708_s3 + $0xa8] sm:$0xff] %v272_v7 }
  0xd1   :  { %328 = vst [vmem:[%s708_s3 + $0xe8] sm:$0xff] %v292_v8 }
  0xd2   :  { %305 = vst [vmem:[%s708_s3 + $0x30] sm:$0xff] %v235_v11 }
  0xd3   :  { %313 = vst [vmem:[%s708_s3 + $0x70] sm:$0xff] %v255_v12 }
  0xd5   :  { %v274_v13 = vpop.f32.mrf.mxu2  ;;  %v294_v14 = vpop.f32.mrf.mxu3 }
  0xd6   :  { %v275_v15 = vadd.f32 %v575_v24, %v274_v13  ;;  %v295_v16 = vadd.f32 %v575_v24, %v294_v14  ;;  %v236_v17 = vpop.f32.mrf.mxu0  ;;  %v256_v18 = vpop.f32.mrf.mxu1 }
  0xd7   :  { %v237_v19 = vadd.f32 %v575_v24, %v236_v17  ;;  %v257_v20 = vadd.f32 %v575_v24, %v256_v18 }
  0xd8   :  { %321 = vst [vmem:[%s708_s3 + $0xb0] sm:$0xff] %v275_v15 }
  0xd9   :  { %329 = vst [vmem:[%s708_s3 + $0xf0] sm:$0xff] %v295_v16 }
  0xda   :  { %306 = vst [vmem:[%s708_s3 + $0x38] sm:$0xff] %v237_v19 }
  0xdb   :  { %314 = vst [vmem:[%s708_s3 + $0x78] sm:$0xff] %v257_v20 }
  0xdd   :  { %v276_v21 = vpop.f32.mrf.mxu2  ;;  %v296_v22 = vpop.f32.mrf.mxu3 }
  0xde   :  { %v277_v23 = vadd.f32 %v575_v24, %v276_v21  ;;  %v297_v25 = vadd.f32 %v575_v24, %v296_v22 }
  0xe0   :  { %322 = vst [vmem:[%s708_s3 + $0xb8] sm:$0xff] %v277_v23 }
  0xe1   :  { %330 = vst [vmem:[%s708_s3 + $0xf8] sm:$0xff] %v297_v25 }

// kernel: seq2seq_decoder_forward.5
= control target key start
LH: loop header
LB: loop body
LE: loop exit
PB: predicated region body
PF: predicated region fallthrough
CT: control target
= control target key end

     0   :  { %13 = vsyncpa [#allocation5], 0  ;;  %s2254_s0 = inlined_call_operand.vmem [shape: bf16[8,8,128], index: 0, kind: input, shape index: {}]   ;;  %s2255_s1 = inlined_call_operand.hbm [shape: bf16[128,384], index: 1, kind: input, shape index: {}]   ;;  %s2256_s2 = inlined_call_operand.vmem [shape: f32[8,384], index: 2, kind: input, shape index: {}]   ;;  %s2257_s3 = inlined_call_operand.hbm [shape: bf16[128,384], index: 3, kind: input, shape index: {}]   ;;  %s2258_s4 = inlined_call_operand.vmem [shape: f32[1,128], index: 4, kind: input, shape index: {}]   ;;  %s2259_s5 = inlined_call_operand.vmem [shape: f32[8,128], index: 5, kind: input, shape index: {}]   ;;  %s2260_s6 = inlined_call_operand.vmem [shape: bf16[8,8,128], index: 6, kind: output, shape index: {0}]   ;;  %s2261_s7 = inlined_call_operand.vmem [shape: f32[8,128], index: 7, kind: output, shape index: {1}]  }
   0x1   :  { %s21_s26 = sshll.u32 %s2255_s1, 4  ;;  %s22_s26 = int_to_ptr.hbm [resolvable:$true] %s21_s26 }
   0x2   :  { %14 = vsyncpa [#allocation7], 0  ;;  %s1769_s27 = smov [#allocation4]   ;;  %s36_s8 = sshll.u32 %s2257_s3, 4  ;;  %s37_s8 = int_to_ptr.hbm [resolvable:$true] %s36_s8 }
   0x3   :  { %s23_s28 = sshll.u32 %s1769_s27, 4  ;;  %s1770_s9 = smov 192   ;;  %s24_s28 = int_to_ptr.vmem [resolvable:$true] %s23_s28 }
   0x4   :  { %s1771_s10 = smov 12   ;;  %s1772_s11 = smov [#allocation6]  }
   0x5   :  { %29 = dma.hbm_to_vmem [thread:$0]  %s22_s26, 3072, %s24_s28, [#allocation5], %s1770_s9, %s1770_s9, %s1771_s10  }
   0x6   :  { %s38_s12 = sshll.u32 %s1772_s11, 4  ;;  %s39_s12 = int_to_ptr.vmem [resolvable:$true] %s38_s12 }
   0x7   :  { %44 = dma.hbm_to_vmem [thread:$0]  %s37_s8, 3072, %s39_s12, [#allocation7], %s1770_s9, %s1770_s9, %s1771_s10  }
   0x8   :  { %1765 = dma.done.wait [#allocation5], 3072  }
   0x9   :  { %1766 = vsyncadd [#allocation5], 4294964224 }
   0xa   :  { %1767 = dma.done.wait [#allocation7], 3072  }
   0xb   :  { %1768 = vsyncadd [#allocation7], 4294964224  ;;  %v1448_v0 = vld [vmem:[#allocation4 + $0xa8] sm:$0xf]  ;;  %v1603_v1 = vld [vmem:[#allocation4 + $0xb0] sm:$0xf0] }
   0xc   :  { %v1544_v2 = vld [vmem:[#allocation6 + $0xa8] sm:$0xf]  ;;  %v1449_v3 = vor.u32 %v1603_v1, %v1448_v0  ;;  %v1627_v4 = vld [vmem:[#allocation6 + $0xb0] sm:$0xf0]  ;;  %v1436_v5 = vld [vmem:[#allocation4 + $0x90] sm:$0xf] }
   0xd   :  { %v1600_v6 = vld [vmem:[#allocation4 + $0x98] sm:$0xf0]  ;;  %v1819_v7 = vor.u32 %v1627_v4, %v1544_v2  ;;  %v1532_v8 = vld [vmem:[#allocation6 + $0x90] sm:$0xf]  ;;  %v1424_v12 = vld [vmem:[#allocation4 + $0x78] sm:$0xf] }
   0xe   :  { %v1624_v9 = vld [vmem:[#allocation6 + $0x98] sm:$0xf0]  ;;  %255 = vmatpush.bf16.msra.mxu0 %v1449_v3  ;;  %v1437_v10 = vor.u32 %v1600_v6, %v1436_v5  ;;  %v1597_v13 = vld [vmem:[#allocation4 + $0x80] sm:$0xf0]  ;;  %v1520_v14 = vld [vmem:[#allocation6 + $0x78] sm:$0xf] }
   0xf   :  { %559 = vmatpush.bf16.msra.mxu3 %v1819_v7  ;;  %v1822_v11 = vor.u32 %v1624_v9, %v1532_v8  ;;  %v1621_v15 = vld [vmem:[#allocation6 + $0x80] sm:$0xf0]  ;;  %v1425_v16 = vor.u32 %v1597_v13, %v1424_v12  ;;  %v1412_v18 = vld [vmem:[#allocation4 + $0x60] sm:$0xf]  ;;  %v1594_v19 = vld [vmem:[#allocation4 + $0x68] sm:$0xf0] }
  0x10   :  { %v1825_v17 = vor.u32 %v1621_v15, %v1520_v14  ;;  %v1508_v20 = vld [vmem:[#allocation6 + $0x60] sm:$0xf]  ;;  %v1618_v21 = vld [vmem:[#allocation6 + $0x68] sm:$0xf0]  ;;  %v1413_v22 = vor.u32 %v1594_v19, %v1412_v18  ;;  %v1400_v24 = vld [vmem:[#allocation4 + $0x48] sm:$0xf] }
  0x11   :  { %v1828_v23 = vor.u32 %v1618_v21, %v1508_v20  ;;  %v1591_v25 = vld [vmem:[#allocation4 + $0x50] sm:$0xf0]  ;;  %v1602_v26 = vld [vmem:[#allocation4 + $0xac] sm:$0xf]  ;;  %v1496_v27 = vld [vmem:[#allocation6 + $0x48] sm:$0xf] }
  0x12   :  { %256 = vmatpush.bf16.msra.mxu0 %v1437_v10  ;;  %v1615_v28 = vld [vmem:[#allocation6 + $0x50] sm:$0xf0]  ;;  %v1450_v29 = vld [vmem:[#allocation4 + $0xb4] sm:$0xf0]  ;;  %v1438_v32 = vld [vmem:[#allocation4 + $0x9c] sm:$0xf0]  ;;  %v1401_v33 = vor.u32 %v1591_v25, %v1400_v24 }
  0x13   :  { %560 = vmatpush.bf16.msra.mxu3 %v1822_v11  ;;  %v1453_v30 = vor.u32 %v1602_v26, %v1450_v29  ;;  %v1599_v31 = vld [vmem:[#allocation4 + $0x94] sm:$0xf]  ;;  %v1831_v34 = vor.u32 %v1615_v28, %v1496_v27  ;;  %v1388_v35 = vld [vmem:[#allocation4 + $0x30] sm:$0xf]  ;;  %v1588_v36 = vld [vmem:[#allocation4 + $0x38] sm:$0xf0] }
  0x14   :  { %v1484_v37 = vld [vmem:[#allocation6 + $0x30] sm:$0xf]  ;;  %v1441_v38 = vor.u32 %v1599_v31, %v1438_v32  ;;  %v1612_v39 = vld [vmem:[#allocation6 + $0x38] sm:$0xf0]  ;;  %v1426_v41 = vld [vmem:[#allocation4 + $0x84] sm:$0xf0]  ;;  %v1389_v42 = vor.u32 %v1588_v36, %v1388_v35 }
  0x15   :  { %284 = vmatpush.bf16.msra.mxu1 %v1453_v30  ;;  %v1596_v40 = vld [vmem:[#allocation4 + $0x7c] sm:$0xf]  ;;  %v1376_v43 = vld [vmem:[#allocation4 + $0x18] sm:$0xf]  ;;  %v1585_v44 = vld [vmem:[#allocation4 + $0x20] sm:$0xf0]  ;;  %v1834_v45 = vor.u32 %v1612_v39, %v1484_v37 }
  0x16   :  { %257 = vmatpush.bf16.msra.mxu0 %v1425_v16  ;;  %v1472_v46 = vld [vmem:[#allocation6 + $0x18] sm:$0xf]  ;;  %v1609_v47 = vld [vmem:[#allocation6 + $0x20] sm:$0xf0]  ;;  %v1429_v48 = vor.u32 %v1596_v40, %v1426_v41  ;;  %v1414_v50 = vld [vmem:[#allocation4 + $0x6c] sm:$0xf0]  ;;  %v1377_v55 = vor.u32 %v1585_v44, %v1376_v43 }
  0x17   :  { %561 = vmatpush.bf16.msra.mxu3 %v1825_v17  ;;  %v1593_v49 = vld [vmem:[#allocation4 + $0x64] sm:$0xf]  ;;  %v1456_v51 = vld [vmem:[#allocation4 + $0xb0] sm:$0xf]  ;;  %v1604_v52 = vld [vmem:[#allocation4 + $0xb8] sm:$0xf0]  ;;  %v1837_v58 = vor.u32 %v1609_v47, %v1472_v46 }
  0x18   :  { %v1364_v53 = vld [vmem:[#allocation4] sm:$0xf]  ;;  %v1457_v54 = vor.u32 %v1604_v52, %v1456_v51  ;;  %v1582_v56 = vld [vmem:[#allocation4 + $0x8] sm:$0xf0]  ;;  %v1546_v61 = vld [vmem:[#allocation6 + $0xb4] sm:$0xf0]  ;;  %v1417_v62 = vor.u32 %v1593_v49, %v1414_v50 }
  0x19   :  { %285 = vmatpush.bf16.msra.mxu1 %v1441_v38  ;;  %v1460_v57 = vld [vmem:[#allocation6] sm:$0xf]  ;;  %v1606_v59 = vld [vmem:[#allocation6 + $0x8] sm:$0xf0]  ;;  %v1552_v63 = vld [vmem:[#allocation6 + $0xb0] sm:$0xf]  ;;  %v1365_v5 = vor.u32 %v1582_v56, %v1364_v53 }
  0x1a   :  { %258 = vmatpush.bf16.msra.mxu0 %v1413_v22  ;;  %v1626_v60 = vld [vmem:[#allocation6 + $0xac] sm:$0xf]  ;;  %v1628_v0 = vld [vmem:[#allocation6 + $0xb8] sm:$0xf0]  ;;  %313 = vmatpush.bf16.msra.mxu2 %v1457_v54  ;;  %v1444_v1 = vld [vmem:[#allocation4 + $0x98] sm:$0xf]  ;;  %v1840_v8 = vor.u32 %v1606_v59, %v1460_v57 }
  0x1b   :  { %562 = vmatpush.bf16.msra.mxu3 %v1828_v23  ;;  %v1590_v2 = vld [vmem:[#allocation4 + $0x4c] sm:$0xf]  ;;  %v1402_v3 = vld [vmem:[#allocation4 + $0x54] sm:$0xf0]  ;;  %v1601_v4 = vld [vmem:[#allocation4 + $0xa0] sm:$0xf0]  ;;  %v1852_v12 = vor.u32 %v1628_v0, %v1552_v63  ;;  %v1854_v15 = vor.u32 %v1626_v60, %v1546_v61 }
  0x1c   :  { %v1445_v6 = vor.u32 %v1601_v4, %v1444_v1  ;;  %v1845_v9 = vld [vmem:[%s2254_s0] sm:$0xff]  ;;  %v1623_v13 = vld [vmem:[#allocation6 + $0x94] sm:$0xf]  ;;  %v1540_v14 = vld [vmem:[#allocation6 + $0x98] sm:$0xf]  ;;  %v1405_v18 = vor.u32 %v1590_v2, %v1402_v3 }
  0x1d   :  { %286 = vmatpush.bf16.msra.mxu1 %v1429_v48  ;;  %v1850_v10 = vld [vmem:[%s2259_s5] sm:$0xff]  ;;  %v1598_v20 = vld [vmem:[#allocation4 + $0x88] sm:$0xf0]  ;;  %v1587_v22 = vld [vmem:[#allocation4 + $0x34] sm:$0xf] }
  0x1e   :  { %259 = vmatpush.bf16.msra.mxu0 %v1401_v33  ;;  %v1625_v16 = vld [vmem:[#allocation6 + $0xa0] sm:$0xf0]  ;;  %314 = vmatpush.bf16.msra.mxu2 %v1445_v6  ;;  %v1432_v19 = vld [vmem:[#allocation4 + $0x80] sm:$0xf]  ;;  %v1858_v26 = vpack.c.bf16 %v1850_v10, %v1850_v10  ;;  %v1620_v27 = vld [vmem:[#allocation6 + $0x7c] sm:$0xf] }
  0x1f   :  { %563 = vmatpush.bf16.msra.mxu3 %v1831_v34  ;;  %v1534_v21 = vld [vmem:[#allocation6 + $0x9c] sm:$0xf0]  ;;  %v1433_v25 = vor.u32 %v1598_v20, %v1432_v19  ;;  %v1862_v28 = vor.u32 %v1625_v16, %v1540_v14  ;;  %v1622_v31 = vld [vmem:[#allocation6 + $0x88] sm:$0xf0]  ;;  %v1420_v33 = vld [vmem:[#allocation4 + $0x68] sm:$0xf] }
  0x20   :  { %v1390_v24 = vld [vmem:[#allocation4 + $0x3c] sm:$0xf0]  ;;  %v1865_v30 = vor.u32 %v1623_v13, %v1534_v21  ;;  %v1595_v35 = vld [vmem:[#allocation4 + $0x70] sm:$0xf0]  ;;  %v1522_v36 = vld [vmem:[#allocation6 + $0x84] sm:$0xf0] }
  0x21   :  { %287 = vmatpush.bf16.msra.mxu1 %v1417_v62  ;;  %v1528_v29 = vld [vmem:[#allocation6 + $0x80] sm:$0xf]  ;;  %v1393_v32 = vor.u32 %v1587_v22, %v1390_v24  ;;  %v1584_v37 = vld [vmem:[#allocation4 + $0x1c] sm:$0xf]  ;;  %v1378_v38 = vld [vmem:[#allocation4 + $0x24] sm:$0xf0]  ;;  %v1421_v39 = vor.u32 %v1595_v35, %v1420_v33  ;;  %v1873_v43 = vor.u32 %v1620_v27, %v1522_v36 }
  0x22   :  { %260 = vmatpush.bf16.msra.mxu0 %v1389_v42  ;;  %315 = vmatpush.bf16.msra.mxu2 %v1433_v25  ;;  %v1408_v40 = vld [vmem:[#allocation4 + $0x50] sm:$0xf]  ;;  %v1592_v41 = vld [vmem:[#allocation4 + $0x58] sm:$0xf0]  ;;  %v1870_v42 = vor.u32 %v1622_v31, %v1528_v29  ;;  %v1617_v44 = vld [vmem:[#allocation6 + $0x64] sm:$0xf]  ;;  %v1381_v48 = vor.u32 %v1584_v37, %v1378_v38 }
  0x23   :  { %564 = vmatpush.bf16.msra.mxu3 %v1834_v45  ;;  %v1516_v46 = vld [vmem:[#allocation6 + $0x68] sm:$0xf]  ;;  %v1619_v47 = vld [vmem:[#allocation6 + $0x70] sm:$0xf0]  ;;  %v1510_v49 = vld [vmem:[#allocation6 + $0x6c] sm:$0xf0]  ;;  %v1409_v52 = vor.u32 %v1592_v41, %v1408_v40 }
  0x24   :  { %v1581_v50 = vld [vmem:[#allocation4 + $0x4] sm:$0xf]  ;;  %v1366_v51 = vld [vmem:[#allocation4 + $0xc] sm:$0xf0]  ;;  %v1396_v53 = vld [vmem:[#allocation4 + $0x38] sm:$0xf]  ;;  %v1879_v56 = vor.u32 %v1617_v44, %v1510_v49 }
  0x25   :  { %288 = vmatpush.bf16.msra.mxu1 %v1405_v18  ;;  %v1589_v54 = vld [vmem:[#allocation4 + $0x40] sm:$0xf0]  ;;  %v1369_v57 = vor.u32 %v1581_v50, %v1366_v51  ;;  %v1504_v59 = vld [vmem:[#allocation6 + $0x50] sm:$0xf]  ;;  %v1616_v60 = vld [vmem:[#allocation6 + $0x58] sm:$0xf0] }
  0x26   :  { %261 = vmatpush.bf16.msra.mxu0 %v1377_v55  ;;  %316 = vmatpush.bf16.msra.mxu2 %v1421_v39  ;;  %v1876_v55 = vor.u32 %v1619_v47, %v1516_v46  ;;  %v1614_v61 = vld [vmem:[#allocation6 + $0x4c] sm:$0xf]  ;;  %v1498_v62 = vld [vmem:[#allocation6 + $0x54] sm:$0xf0]  ;;  %v1397_v63 = vor.u32 %v1589_v54, %v1396_v53  ;;  %v1384_v0 = vld [vmem:[#allocation4 + $0x20] sm:$0xf]  ;;  %v1882_v2 = vor.u32 %v1616_v60, %v1504_v59 }
  0x27   :  { %565 = vmatpush.bf16.msra.mxu3 %v1837_v58  ;;  %v1586_v1 = vld [vmem:[#allocation4 + $0x28] sm:$0xf0]  ;;  %v1885_v3 = vor.u32 %v1614_v61, %v1498_v62  ;;  %v1492_v4 = vld [vmem:[#allocation6 + $0x38] sm:$0xf]  ;;  %v1611_v13 = vld [vmem:[#allocation6 + $0x34] sm:$0xf] }
  0x28   :  { %v1578_v6 = vld [vmem:[%s2254_s0 + $0x8] sm:$0xff]  ;;  %v1486_v14 = vld [vmem:[#allocation6 + $0x3c] sm:$0xf0]  ;;  %v1385_v16 = vor.u32 %v1586_v1, %v1384_v0  ;;  %v1608_v20 = vld [vmem:[#allocation6 + $0x1c] sm:$0xf] }
  0x29   :  { %289 = vmatpush.bf16.msra.mxu1 %v1393_v32  ;;  %v1896_v19 = vor.u32 %v1611_v13, %v1486_v14  ;;  %v1372_v21 = vld [vmem:[#allocation4 + $0x8] sm:$0xf]  ;;  %v1583_v22 = vld [vmem:[#allocation4 + $0x10] sm:$0xf0]  ;;  %v1480_v25 = vld [vmem:[#allocation6 + $0x20] sm:$0xf] }
  0x2a   :  { %262 = vmatpush.bf16.msra.mxu0 %v1365_v5  ;;  %317 = vmatpush.bf16.msra.mxu2 %v1409_v52  ;;  %v1613_v5 = vld [vmem:[#allocation6 + $0x40] sm:$0xf0]  ;;  %v1474_v24 = vld [vmem:[#allocation6 + $0x24] sm:$0xf0]  ;;  %v1610_v27 = vld [vmem:[#allocation6 + $0x28] sm:$0xf0]  ;;  %v1373_v29 = vor.u32 %v1583_v22, %v1372_v21 }
  0x2b   :  { %566 = vmatpush.bf16.msra.mxu3 %v1840_v8  ;;  %v1893_v18 = vor.u32 %v1613_v5, %v1492_v4  ;;  %v1900_v31 = vor.u32 %v1610_v27, %v1480_v25  ;;  %v1903_v32 = vor.u32 %v1608_v20, %v1474_v24  ;;  %v1468_v33 = vld [vmem:[#allocation6 + $0x8] sm:$0xf]  ;;  %v1607_v35 = vld [vmem:[#allocation6 + $0x10] sm:$0xf0]  ;;  %v1605_v36 = vld [vmem:[#allocation6 + $0x4] sm:$0xf] }
  0x2c   :  { %v1462_v37 = vld [vmem:[#allocation6 + $0xc] sm:$0xf0]  ;;  %v1908_v38 = vor.u32 %v1607_v35, %v1468_v33  ;;  %v342_v44 = vld [vmem:[%s2256_s2] sm:$0xff]  ;;  %v1996_v61 = vld [vmem:[%s2256_s2 + $0x8] sm:$0xff] }
  0x2d   :  { %263 = vmatmul.bf16.vlgmr.msra.gmra.mxu0 %v1845_v9  ;;  %290 = vmatpush.bf16.msra.mxu1 %v1381_v48  ;;  %v1911_v39 = vor.u32 %v1605_v36, %v1462_v37  ;;  %v1579_v40 = vld [vmem:[%s2254_s0 + $0x10] sm:$0xff] }
  0x2e   :  { %585 = vmatpush.bf16.msrb.mxu0 %v1852_v12  ;;  %567 = vmatmul.bf16.vlgmr.msra.gmra.mxu3 %v1858_v26  ;;  %v2004_v5 = vld [vmem:[%s2256_s2 + $0x10] sm:$0xff] }
  0x2f   :  { %572 = vmatpush.bf16.msrb.mxu3 %v1854_v15  ;;  %318 = vmatpush.bf16.msra.mxu2 %v1397_v63 }
  0x31   :  { %291 = vmatpush.bf16.msra.mxu1 %v1369_v57 }
  0x32   :  { %586 = vmatpush.bf16.msrb.mxu0 %v1862_v28 }
  0x33   :  { %573 = vmatpush.bf16.msrb.mxu3 %v1865_v30  ;;  %319 = vmatpush.bf16.msra.mxu2 %v1385_v16 }
  0x34   :  { %292 = vmatmul.bf16.vlgmr.msra.gmra.mxu1 %v1845_v9 }
  0x35   :  { %658 = vmatpush.bf16.msrb.mxu1 %v1819_v7 }
  0x36   :  { %587 = vmatpush.bf16.msrb.mxu0 %v1870_v42 }
  0x37   :  { %574 = vmatpush.bf16.msrb.mxu3 %v1873_v43  ;;  %320 = vmatpush.bf16.msra.mxu2 %v1373_v29 }
  0x39   :  { %659 = vmatpush.bf16.msrb.mxu1 %v1822_v11 }
  0x3a   :  { %588 = vmatpush.bf16.msrb.mxu0 %v1876_v55  ;;  %321 = vmatmul.bf16.vlgmr.msra.gmra.mxu2 %v1845_v9  ;;  %v1580_v9 = vld [vmem:[%s2254_s0 + $0x18] sm:$0xff] }
  0x3b   :  { %575 = vmatpush.bf16.msrb.mxu3 %v1879_v56  ;;  %671 = vmatpush.bf16.msrb.mxu2 %v1854_v15 }
  0x3d   :  { %268 = vmatmul.bf16.gmra.mxu0 %v1578_v6  ;;  %660 = vmatpush.bf16.msrb.mxu1 %v1825_v17 }
  0x3e   :  { %589 = vmatpush.bf16.msrb.mxu0 %v1882_v2 }
  0x3f   :  { %576 = vmatpush.bf16.msrb.mxu3 %v1885_v3  ;;  %672 = vmatpush.bf16.msrb.mxu2 %v1865_v30 }
  0x41   :  { %661 = vmatpush.bf16.msrb.mxu1 %v1828_v23 }
  0x42   :  { %590 = vmatpush.bf16.msrb.mxu0 %v1893_v18 }
  0x43   :  { %577 = vmatpush.bf16.msrb.mxu3 %v1896_v19  ;;  %673 = vmatpush.bf16.msrb.mxu2 %v1873_v43 }
  0x44   :  { %297 = vmatmul.bf16.gmra.mxu1 %v1578_v6 }
  0x45   :  { %662 = vmatpush.bf16.msrb.mxu1 %v1831_v34 }
  0x46   :  { %591 = vmatpush.bf16.msrb.mxu0 %v1900_v31 }
  0x47   :  { %578 = vmatpush.bf16.msrb.mxu3 %v1903_v32  ;;  %674 = vmatpush.bf16.msrb.mxu2 %v1879_v56 }
  0x49   :  { %663 = vmatpush.bf16.msrb.mxu1 %v1834_v45 }
  0x4a   :  { %592 = vmatpush.bf16.msrb.mxu0 %v1908_v38  ;;  %326 = vmatmul.bf16.gmra.mxu2 %v1578_v6 }
  0x4b   :  { %579 = vmatpush.bf16.msrb.mxu3 %v1911_v39  ;;  %675 = vmatpush.bf16.msrb.mxu2 %v1885_v3 }
  0x4d   :  { %273 = vmatmul.bf16.gmra.mxu0 %v1579_v40  ;;  %664 = vmatpush.bf16.msrb.mxu1 %v1837_v58 }
  0x4e   :  { %755 = vmatpush.bf16.msra.mxu0 %v1819_v7  ;;  %580 = vmatmul.bf16.vlgmr.msrb.gmra.mxu3 %v1858_v26 }
  0x4f   :  { %684 = vmatpush.bf16.msra.mxu3 %v1852_v12  ;;  %676 = vmatpush.bf16.msrb.mxu2 %v1896_v19 }
  0x51   :  { %665 = vmatpush.bf16.msrb.mxu1 %v1840_v8 }
  0x52   :  { %756 = vmatpush.bf16.msra.mxu0 %v1822_v11 }
  0x53   :  { %685 = vmatpush.bf16.msra.mxu3 %v1862_v28  ;;  %677 = vmatpush.bf16.msrb.mxu2 %v1903_v32 }
  0x54   :  { %302 = vmatmul.bf16.gmra.mxu1 %v1579_v40 }
  0x55   :  { %768 = vmatpush.bf16.msra.mxu1 %v1854_v15 }
  0x56   :  { %757 = vmatpush.bf16.msra.mxu0 %v1825_v17 }
  0x57   :  { %686 = vmatpush.bf16.msra.mxu3 %v1870_v42  ;;  %678 = vmatpush.bf16.msrb.mxu2 %v1911_v39 }
  0x59   :  { %769 = vmatpush.bf16.msra.mxu1 %v1865_v30 }
  0x5a   :  { %758 = vmatpush.bf16.msra.mxu0 %v1828_v23  ;;  %331 = vmatmul.bf16.gmra.mxu2 %v1579_v40 }
  0x5b   :  { %687 = vmatpush.bf16.msra.mxu3 %v1876_v55  ;;  %781 = vmatpush.bf16.msra.mxu2 %v1852_v12 }
  0x5d   :  { %278 = vmatmul.bf16.gmra.mxu0 %v1580_v9  ;;  %770 = vmatpush.bf16.msra.mxu1 %v1873_v43 }
  0x5e   :  { %759 = vmatpush.bf16.msra.mxu0 %v1831_v34 }
  0x5f   :  { %688 = vmatpush.bf16.msra.mxu3 %v1882_v2  ;;  %782 = vmatpush.bf16.msra.mxu2 %v1862_v28 }
  0x61   :  { %771 = vmatpush.bf16.msra.mxu1 %v1879_v56 }
  0x62   :  { %760 = vmatpush.bf16.msra.mxu0 %v1834_v45 }
  0x63   :  { %689 = vmatpush.bf16.msra.mxu3 %v1893_v18  ;;  %783 = vmatpush.bf16.msra.mxu2 %v1870_v42 }
  0x64   :  { %307 = vmatmul.bf16.gmra.mxu1 %v1580_v9 }
  0x65   :  { %772 = vmatpush.bf16.msra.mxu1 %v1885_v3 }
  0x66   :  { %761 = vmatpush.bf16.msra.mxu0 %v1837_v58 }
  0x67   :  { %690 = vmatpush.bf16.msra.mxu3 %v1900_v31  ;;  %784 = vmatpush.bf16.msra.mxu2 %v1876_v55 }
  0x69   :  { %773 = vmatpush.bf16.msra.mxu1 %v1896_v19 }
  0x6a   :  { %762 = vmatpush.bf16.msra.mxu0 %v1840_v8  ;;  %336 = vmatmul.bf16.gmra.mxu2 %v1580_v9 }
  0x6b   :  { %691 = vmatpush.bf16.msra.mxu3 %v1908_v38  ;;  %785 = vmatpush.bf16.msra.mxu2 %v1882_v2 }
  0x6d   :  { %593 = vmatmul.bf16.vlgmr.msrb.gmra.mxu0 %v1858_v26  ;;  %774 = vmatpush.bf16.msra.mxu1 %v1903_v32 }
  0x6e   :  { %865 = vmatpush.bf16.msrb.mxu0 %v1854_v15 }
  0x6f   :  { %852 = vmatpush.bf16.msrb.mxu3 %v1819_v7  ;;  %786 = vmatpush.bf16.msra.mxu2 %v1893_v18 }
  0x71   :  { %775 = vmatpush.bf16.msra.mxu1 %v1911_v39 }
  0x72   :  { %866 = vmatpush.bf16.msrb.mxu0 %v1865_v30 }
  0x73   :  { %853 = vmatpush.bf16.msrb.mxu3 %v1822_v11  ;;  %787 = vmatpush.bf16.msra.mxu2 %v1900_v31 }
  0x76   :  { %867 = vmatpush.bf16.msrb.mxu0 %v1873_v43 }
  0x77   :  { %854 = vmatpush.bf16.msrb.mxu3 %v1825_v17  ;;  %788 = vmatpush.bf16.msra.mxu2 %v1908_v38 }
  0x7a   :  { %868 = vmatpush.bf16.msrb.mxu0 %v1879_v56 }
  0x7b   :  { %855 = vmatpush.bf16.msrb.mxu3 %v1828_v23 }
  0x7e   :  { %869 = vmatpush.bf16.msrb.mxu0 %v1885_v3 }
  0x7f   :  { %856 = vmatpush.bf16.msrb.mxu3 %v1831_v34 }
  0x82   :  { %870 = vmatpush.bf16.msrb.mxu0 %v1896_v19 }
  0x83   :  { %857 = vmatpush.bf16.msrb.mxu3 %v1834_v45 }
  0x86   :  { %871 = vmatpush.bf16.msrb.mxu0 %v1903_v32 }
  0x87   :  { %858 = vmatpush.bf16.msrb.mxu3 %v1837_v58 }
  0x8a   :  { %872 = vmatpush.bf16.msrb.mxu0 %v1911_v39 }
  0x8b   :  { %859 = vmatpush.bf16.msrb.mxu3 %v1840_v8 }
  0xaa   :  { %v264_v26 = vpop.f32.mrf.mxu0 }
  0xab   :  { %v345_v48 = vadd.f32 %v342_v44, %v264_v26 }
  0xb1   :  { %v568_v41 = vpop.f32.mrf.mxu3  ;;  %v293_v60 = vpop.f32.mrf.mxu1 }
  0xb2   :  { %v266_v46 = vpop.f32.mrf.mxu0  ;;  %v598_v51 = vadd.f32 %v568_v41, %v345_v48  ;;  %v346_v1 = vadd.f32 %v1996_v61, %v293_v60  ;;  %v2021_v60 = vld [vmem:[%s2258_s4] ss:$0 sm:$0xff] }
  0xb3   :  { %v1987_v47 = vadd.f32 %v342_v44, %v266_v46 }
  0xb4   :  { %v1554_v53 = vmul.f32 -1.442695, %v598_v51 }
  0xb6   :  { %1634 = vpow2.f32 %v1554_v53 }
  0xb9   :  { %v570_v49 = vpop.f32.mrf.mxu3 }
  0xba   :  { %v269_v50 = vpop.f32.mrf.mxu0 }
  0xbb   :  { %v1989_v52 = vadd.f32 %v342_v44, %v269_v50 }
  0xbc   :  { %v1635_v62 = vpop.eup %1634 }
  0xbd   :  { %v322_v59 = vpop.f32.mrf.mxu2  ;;  %v602_v4 = vadd.f32 1.0, %v1635_v62 }
  0xbf   :  { %1636 = vrcp.f32 %v602_v4  ;;  %v614_v53 = vand.u32 2147483648, %v602_v4  ;;  %vm608_vm1 = vweird.f32 %v602_v4 }
  0xc2   :  { %v271_v54 = vpop.f32.mrf.mxu0 }
  0xc3   :  { %v1991_v57 = vadd.f32 %v342_v44, %v271_v54  ;;  %v612_v54 = vand.u32 2147483647, %v602_v4 }
  0xc5   :  { %v324_v14 = vpop.f32.mrf.mxu2  ;;  %v1637_v24 = vpop.eup %1636  ;;  %vm613_vm3 = vcmp.eq.f32.partialorder %v612_v54, 8.507059e+37 }
  0xc6   :  { %v2007_v16 = vadd.f32 %v2004_v5, %v324_v14  ;;  %v604_v29 = vmul.f32 %v1637_v24, %v602_v4  ;;  %vm609_vm0 = vweird.f32 %v1637_v24  ;;  %v347_v14 = vadd.f32 %v2004_v5, %v322_v59 }
  0xc7   :  { %vm610_vm2 = vmor %vm608_vm1, %vm609_vm0 }
  0xc8   :  { %v605_v37 = vsub.f32 1.0, %v604_v29 }
  0xca   :  { %v274_v63 = vpop.f32.mrf.mxu0  ;;  %v606_v26 = vmul.f32 %v1637_v24, %v605_v37 }
  0xcb   :  { %v1998_v0 = vadd.f32 %v342_v44, %v274_v63 }
  0xcc   :  { %v607_v51 = vadd.f32 %v1637_v24, %v606_v26 }
  0xcd   :  { %v327_v40 = vpop.f32.mrf.mxu2 }
  0xce   :  { %v2014_v9 = vadd.f32 %v2004_v5, %v327_v40 }
  0xd1   :  { %v581_v6 = vpop.f32.mrf.mxu3 }
  0xd2   :  { %v618_v13 = vadd.f32 %v581_v6, %v346_v1  ;;  %v276_v21 = vpop.f32.mrf.mxu0  ;;  %v611_v6 = vsel %vm610_vm2, %v1637_v24, %v607_v51 }
  0xd3   :  { %v2009_v22 = vadd.f32 %v342_v44, %v276_v21 }
  0xd4   :  { %v1555_v20 = vmul.f32 -1.442695, %v618_v13  ;;  %v615_v13 = vor.u32 1.1754944e-38, %v614_v53 }
  0xd5   :  { %v329_v62 = vpop.f32.mrf.mxu2 }
  0xd6   :  { %1638 = vpow2.f32 %v1555_v20  ;;  %v2024_v1 = vadd.f32 %v2004_v5, %v329_v62  ;;  %v616_v4 = vsel %vm613_vm3, %v615_v13, %v611_v6 }
  0xd9   :  { %v583_v25 = vpop.f32.mrf.mxu3 }
  0xda   :  { %v279_v35 = vpop.f32.mrf.mxu0 }
  0xdb   :  { %v2011_v36 = vadd.f32 %v342_v44, %v279_v35 }
  0xdc   :  { %v1639_v27 = vpop.eup %1638 }
  0xdd   :  { %v622_v33 = vadd.f32 1.0, %v1639_v27  ;;  %v332_v37 = vpop.f32.mrf.mxu2 }
  0xde   :  { %v2029_v24 = vadd.f32 %v2004_v5, %v332_v37 }
  0xdf   :  { %1640 = vrcp.f32 %v622_v33  ;;  %vm628_vm4 = vweird.f32 %v622_v33  ;;  %v634_v25 = vand.u32 2147483648, %v622_v33  ;;  %v632_v29 = vand.u32 2147483647, %v622_v33 }
  0xe1   :  { %v635_v26 = vor.u32 1.1754944e-38, %v634_v25  ;;  %vm633_vm7 = vcmp.eq.f32.partialorder %v632_v29, 8.507059e+37 }
  0xe2   :  { %v281_v46 = vpop.f32.mrf.mxu0 }
  0xe3   :  { %v2016_v49 = vadd.f32 %v342_v44, %v281_v46 }
  0xe5   :  { %v1641_v41 = vpop.eup %1640  ;;  %2262 = vst [vmem:[#allocation10_spill] sm:$0xff] %v2016_v49  ;;  %v334_v51 = vpop.f32.mrf.mxu2 }
  0xe6   :  { %v624_v48 = vmul.f32 %v1641_v41, %v622_v33  ;;  %vm629_vm5 = vweird.f32 %v1641_v41  ;;  %v2033_v33 = vadd.f32 %v2004_v5, %v334_v51 }
  0xe7   :  { %vm630_vm6 = vmor %vm628_vm4, %vm629_vm5 }
  0xe8   :  { %v625_v50 = vsub.f32 1.0, %v624_v48 }
  0xea   :  { %v626_v63 = vmul.f32 %v1641_v41, %v625_v50  ;;  %v594_v44 = vpop.f32.mrf.mxu0 }
  0xeb   :  { %v641_v20 = vadd.f32 %v2021_v60, %v594_v44 }
  0xec   :  { %v627_v21 = vadd.f32 %v1641_v41, %v626_v63 }
  0xed   :  { %v642_v27 = vmul.f32 %v641_v20, %v616_v4  ;;  %v337_v63 = vpop.f32.mrf.mxu2 }
  0xee   :  { %v631_v40 = vsel %vm630_vm6, %v1641_v41, %v627_v21 }
  0xef   :  { %v643_v35 = vadd.f32 %v642_v27, %v347_v14  ;;  %v636_v46 = vsel %vm633_vm7, %v635_v26, %v631_v40 }
  0xf0   :  { %v645_v48 = vsub.f32 1.0, %v636_v46  ;;  %v647_v54 = vmul.f32 %v636_v46, %v1850_v10  ;;  %v2044_v10 = vadd.f32 %v2004_v5, %v337_v63  ;;  %v295_v5 = vpop.f32.mrf.mxu1 }
  0xf1   :  { %1642 = vtanh.f32 %v643_v35  ;;  %v349_v35 = vadd.f32 %v1996_v61, %v295_v5 }
  0xf2   :  { %v596_v59 = vpop.f32.mrf.mxu0 }
  0xf5   :  { %v2081_v21 = vpop.f32.mrf.mxu2 }
  0xf6   :  { %2264 = vst [vmem:[#allocation12_spill] sm:$0xff] %v2081_v21 }
  0xf7   :  { %v1643_v50 = vpop.eup %1642 }
  0xf8   :  { %v646_v53 = vmul.f32 %v1643_v50, %v645_v48  ;;  %v2069_v6 = vpop.f32.mrf.mxu1 }
  0xfa   :  { %v2035_v62 = vadd.f32 %v647_v54, %v646_v53 }
  0xfc   :  { %v650_v41 = vpack.c.bf16 %v2035_v62, %v2035_v62 }
  0xfe   :  { %651 = vst [vmem:[%s2260_s6] sm:$0xf] %v650_v41  ;;  %666 = vmatmul.bf16.vlgmr.msrb.gmra.mxu1 %v650_v41  ;;  %679 = vmatmul.bf16.vlgmr.msrb.gmra.mxu2 %v650_v41 }
  0xff   :  { %692 = vmatmul.bf16.vlgmr.msra.gmra.mxu3 %v650_v41  ;;  %878 = vmatpush.bf16.msrb.mxu1 %v1852_v12 }
 0x100   :  { %949 = vmatpush.bf16.msrb.mxu2 %v1819_v7  ;;  %962 = vmatpush.bf16.msra.mxu3 %v1854_v15  ;;  %v2071_v44 = vpop.f32.mrf.mxu1 }
 0x103   :  { %879 = vmatpush.bf16.msrb.mxu1 %v1862_v28 }
 0x104   :  { %950 = vmatpush.bf16.msrb.mxu2 %v1822_v11  ;;  %963 = vmatpush.bf16.msra.mxu3 %v1865_v30 }
 0x107   :  { %880 = vmatpush.bf16.msrb.mxu1 %v1870_v42 }
 0x108   :  { %951 = vmatpush.bf16.msrb.mxu2 %v1825_v17  ;;  %964 = vmatpush.bf16.msra.mxu3 %v1873_v43  ;;  %v2073_v13 = vpop.f32.mrf.mxu1 }
 0x10b   :  { %881 = vmatpush.bf16.msrb.mxu1 %v1876_v55 }
 0x10c   :  { %952 = vmatpush.bf16.msrb.mxu2 %v1828_v23  ;;  %965 = vmatpush.bf16.msra.mxu3 %v1879_v56 }
 0x10f   :  { %882 = vmatpush.bf16.msrb.mxu1 %v1882_v2 }
 0x110   :  { %953 = vmatpush.bf16.msrb.mxu2 %v1831_v34  ;;  %966 = vmatpush.bf16.msra.mxu3 %v1885_v3  ;;  %v2075_v14 = vpop.f32.mrf.mxu1 }
 0x113   :  { %883 = vmatpush.bf16.msrb.mxu1 %v1893_v18 }
 0x114   :  { %954 = vmatpush.bf16.msrb.mxu2 %v1834_v45  ;;  %967 = vmatpush.bf16.msra.mxu3 %v1896_v19 }
 0x117   :  { %884 = vmatpush.bf16.msrb.mxu1 %v1900_v31 }
 0x118   :  { %955 = vmatpush.bf16.msrb.mxu2 %v1837_v58  ;;  %968 = vmatpush.bf16.msra.mxu3 %v1903_v32  ;;  %v2077_v20 = vpop.f32.mrf.mxu1 }
 0x11b   :  { %885 = vmatpush.bf16.msrb.mxu1 %v1908_v38 }
 0x11c   :  { %956 = vmatpush.bf16.msrb.mxu2 %v1840_v8  ;;  %969 = vmatpush.bf16.msra.mxu3 %v1911_v39 }
 0x120   :  { %v2079_v4 = vpop.f32.mrf.mxu1 }
 0x121   :  { %2263 = vst [vmem:[#allocation11_spill] sm:$0xff] %v2079_v4 }
 0x17b   :  { %v667_v25 = vpop.f32.mrf.mxu1 }
 0x17c   :  { %v697_v27 = vadd.f32 %v667_v25, %v1987_v47 }
 0x17e   :  { %v1556_v29 = vmul.f32 -1.442695, %v697_v27 }
 0x180   :  { %1644 = vpow2.f32 %v1556_v29 }
 0x181   :  { %v680_v37 = vpop.f32.mrf.mxu2 }
 0x182   :  { %v717_v40 = vadd.f32 %v680_v37, %v349_v35  ;;  %v693_v26 = vpop.f32.mrf.mxu3 }
 0x183   :  { %v669_v59 = vpop.f32.mrf.mxu1 }
 0x184   :  { %v1557_v46 = vmul.f32 -1.442695, %v717_v40 }
 0x186   :  { %v1645_v48 = vpop.eup %1644  ;;  %1646 = vpow2.f32 %v1557_v46 }
 0x187   :  { %v701_v50 = vadd.f32 1.0, %v1645_v48 }
 0x189   :  { %1648 = vrcp.f32 %v701_v50  ;;  %v682_v51 = vpop.f32.mrf.mxu2  ;;  %v713_v27 = vand.u32 2147483648, %v701_v50  ;;  %v711_v29 = vand.u32 2147483647, %v701_v50  ;;  %vm707_vm9 = vweird.f32 %v701_v50 }
 0x18a   :  { %v695_v53 = vpop.f32.mrf.mxu3  ;;  %v737_v51 = vadd.f32 %v2021_v60, %v693_v26 }
 0x18b   :  { %v714_v40 = vor.u32 1.1754944e-38, %v713_v27  ;;  %vm712_vm11 = vcmp.eq.f32.partialorder %v711_v29, 8.507059e+37 }
 0x18c   :  { %v1647_v54 = vpop.eup %1646 }
 0x18d   :  { %v721_v41 = vadd.f32 1.0, %v1647_v54 }
 0x18f   :  { %v1649_v63 = vpop.eup %1648  ;;  %1650 = vrcp.f32 %v721_v41  ;;  %v733_v21 = vand.u32 2147483648, %v721_v41  ;;  %v731_v49 = vand.u32 2147483647, %v721_v41  ;;  %vm727_vm13 = vweird.f32 %v721_v41 }
 0x190   :  { %v703_v47 = vmul.f32 %v1649_v63, %v701_v50  ;;  %vm708_vm8 = vweird.f32 %v1649_v63 }
 0x191   :  { %vm709_vm10 = vmor %vm707_vm9, %vm708_vm8  ;;  %vm732_vm15 = vcmp.eq.f32.partialorder %v731_v49, 8.507059e+37 }
 0x192   :  { %v704_v25 = vsub.f32 1.0, %v703_v47 }
 0x194   :  { %v705_v5 = vmul.f32 %v1649_v63, %v704_v25 }
 0x195   :  { %v1651_v35 = vpop.eup %1650 }
 0x196   :  { %v723_v37 = vmul.f32 %v1651_v35, %v721_v41  ;;  %v706_v59 = vadd.f32 %v1649_v63, %v705_v5  ;;  %vm728_vm12 = vweird.f32 %v1651_v35  ;;  %v734_v5 = vor.u32 1.1754944e-38, %v733_v21 }
 0x197   :  { %vm729_vm14 = vmor %vm727_vm13, %vm728_vm12 }
 0x198   :  { %v724_v46 = vsub.f32 1.0, %v723_v37  ;;  %v710_v48 = vsel %vm709_vm10, %v1649_v63, %v706_v59 }
 0x199   :  { %v715_v53 = vsel %vm712_vm11, %v714_v40, %v710_v48 }
 0x19a   :  { %v725_v54 = vmul.f32 %v1651_v35, %v724_v46  ;;  %v738_v47 = vmul.f32 %v737_v51, %v715_v53 }
 0x19c   :  { %v739_v25 = vadd.f32 %v738_v47, %v2007_v16  ;;  %v726_v4 = vadd.f32 %v1651_v35, %v725_v54  ;;  %v352_v16 = vadd.f32 %v1996_v61, %v2069_v6 }
 0x19e   :  { %1652 = vtanh.f32 %v739_v25  ;;  %v730_v50 = vsel %vm729_vm14, %v1651_v35, %v726_v4 }
 0x19f   :  { %v735_v27 = vsel %vm732_vm15, %v734_v5, %v730_v50 }
 0x1a0   :  { %v741_v63 = vsub.f32 1.0, %v735_v27  ;;  %v743_v26 = vmul.f32 %v735_v27, %v2035_v62 }
 0x1a4   :  { %v1653_v29 = vpop.eup %1652 }
 0x1a5   :  { %v742_v37 = vmul.f32 %v1653_v29, %v741_v63 }
 0x1a7   :  { %v2088_v59 = vadd.f32 %v743_v26, %v742_v37 }
 0x1a9   :  { %v746_v40 = vpack.c.bf16 %v2088_v59, %v2088_v59 }
 0x1ab   :  { %1558 = vst [vmem:[%s2260_s6 + $0x4] sm:$0xf] %v746_v40  ;;  %763 = vmatmul.bf16.vlgmr.msra.gmra.mxu0 %v746_v40  ;;  %776 = vmatmul.bf16.vlgmr.msra.gmra.mxu1 %v746_v40 }
 0x1ac   :  { %789 = vmatmul.bf16.vlgmr.msra.gmra.mxu2 %v746_v40  ;;  %975 = vmatpush.bf16.msra.mxu0 %v1852_v12 }
 0x1ad   :  { %1046 = vmatpush.bf16.msra.mxu1 %v1819_v7  ;;  %1059 = vmatpush.bf16.msra.mxu2 %v1854_v15 }
 0x1b0   :  { %976 = vmatpush.bf16.msra.mxu0 %v1862_v28 }
 0x1b1   :  { %1047 = vmatpush.bf16.msra.mxu1 %v1822_v11  ;;  %1060 = vmatpush.bf16.msra.mxu2 %v1865_v30 }
 0x1b4   :  { %977 = vmatpush.bf16.msra.mxu0 %v1870_v42 }
 0x1b5   :  { %1048 = vmatpush.bf16.msra.mxu1 %v1825_v17  ;;  %1061 = vmatpush.bf16.msra.mxu2 %v1873_v43 }
 0x1b8   :  { %978 = vmatpush.bf16.msra.mxu0 %v1876_v55 }
 0x1b9   :  { %1049 = vmatpush.bf16.msra.mxu1 %v1828_v23  ;;  %1062 = vmatpush.bf16.msra.mxu2 %v1879_v56 }
 0x1bc   :  { %979 = vmatpush.bf16.msra.mxu0 %v1882_v2 }
 0x1bd   :  { %1050 = vmatpush.bf16.msra.mxu1 %v1831_v34  ;;  %1063 = vmatpush.bf16.msra.mxu2 %v1885_v3 }
 0x1c0   :  { %980 = vmatpush.bf16.msra.mxu0 %v1893_v18 }
 0x1c1   :  { %1051 = vmatpush.bf16.msra.mxu1 %v1834_v45  ;;  %1064 = vmatpush.bf16.msra.mxu2 %v1896_v19 }
 0x1c4   :  { %981 = vmatpush.bf16.msra.mxu0 %v1900_v31 }
 0x1c5   :  { %1052 = vmatpush.bf16.msra.mxu1 %v1837_v58  ;;  %1065 = vmatpush.bf16.msra.mxu2 %v1903_v32 }
 0x1c8   :  { %982 = vmatpush.bf16.msra.mxu0 %v1908_v38 }
 0x1c9   :  { %1053 = vmatpush.bf16.msra.mxu1 %v1840_v8  ;;  %1066 = vmatpush.bf16.msra.mxu2 %v1911_v39 }
 0x228   :  { %v764_v49 = vpop.f32.mrf.mxu0  ;;  %v777_v62 = vpop.f32.mrf.mxu1 }
 0x229   :  { %v794_v4 = vadd.f32 %v764_v49, %v1989_v52  ;;  %v814_v21 = vadd.f32 %v777_v62, %v352_v16 }
 0x22b   :  { %v1559_v41 = vmul.f32 -1.442695, %v794_v4  ;;  %v1560_v35 = vmul.f32 -1.442695, %v814_v21 }
 0x22d   :  { %1654 = vpow2.f32 %v1559_v41 }
 0x22e   :  { %1656 = vpow2.f32 %v1560_v35 }
 0x22f   :  { %v790_v46 = vpop.f32.mrf.mxu2 }
 0x230   :  { %v766_v48 = vpop.f32.mrf.mxu0  ;;  %v779_v51 = vpop.f32.mrf.mxu1  ;;  %v834_v21 = vadd.f32 %v2021_v60, %v790_v46 }
 0x233   :  { %v1655_v53 = vpop.eup %1654 }
 0x234   :  { %v1657_v54 = vpop.eup %1656  ;;  %v798_v47 = vadd.f32 1.0, %v1655_v53 }
 0x235   :  { %v818_v25 = vadd.f32 1.0, %v1657_v54 }
 0x236   :  { %1658 = vrcp.f32 %v798_v47  ;;  %v810_v37 = vand.u32 2147483648, %v798_v47  ;;  %v808_v40 = vand.u32 2147483647, %v798_v47  ;;  %vm804_vm1 = vweird.f32 %v798_v47 }
 0x237   :  { %1660 = vrcp.f32 %v818_v25  ;;  %v792_v5 = vpop.f32.mrf.mxu2  ;;  %v830_v48 = vand.u32 2147483648, %v818_v25  ;;  %vm824_vm5 = vweird.f32 %v818_v25  ;;  %v828_v53 = vand.u32 2147483647, %v818_v25 }
 0x238   :  { %v811_v62 = vor.u32 1.1754944e-38, %v810_v37  ;;  %vm809_vm3 = vcmp.eq.f32.partialorder %v808_v40, 8.507059e+37 }
 0x239   :  { %vm829_vm7 = vcmp.eq.f32.partialorder %v828_v53, 8.507059e+37 }
 0x23c   :  { %v1659_v6 = vpop.eup %1658 }
 0x23d   :  { %v1661_v50 = vpop.eup %1660  ;;  %v800_v27 = vmul.f32 %v1659_v6, %v798_v47  ;;  %vm805_vm0 = vweird.f32 %v1659_v6 }
 0x23e   :  { %v820_v63 = vmul.f32 %v1661_v50, %v818_v25  ;;  %vm806_vm2 = vmor %vm804_vm1, %vm805_vm0  ;;  %vm825_vm4 = vweird.f32 %v1661_v50 }
 0x23f   :  { %v801_v52 = vsub.f32 1.0, %v800_v27  ;;  %vm826_vm6 = vmor %vm824_vm5, %vm825_vm4  ;;  %v831_v27 = vor.u32 1.1754944e-38, %v830_v48 }
 0x240   :  { %v821_v29 = vsub.f32 1.0, %v820_v63 }
 0x241   :  { %v802_v26 = vmul.f32 %v1659_v6, %v801_v52 }
 0x242   :  { %v822_v16 = vmul.f32 %v1661_v50, %v821_v29 }
 0x243   :  { %v803_v49 = vadd.f32 %v1659_v6, %v802_v26 }
 0x244   :  { %v823_v35 = vadd.f32 %v1661_v50, %v822_v16 }
 0x245   :  { %v807_v4 = vsel %vm806_vm2, %v1659_v6, %v803_v49 }
 0x246   :  { %v812_v41 = vsel %vm809_vm3, %v811_v62, %v807_v4  ;;  %v827_v5 = vsel %vm826_vm6, %v1661_v50, %v823_v35 }
 0x247   :  { %v835_v51 = vmul.f32 %v834_v21, %v812_v41  ;;  %v832_v47 = vsel %vm829_vm7, %v831_v27, %v827_v5 }
 0x248   :  { %v838_v63 = vsub.f32 1.0, %v832_v47  ;;  %v840_v46 = vmul.f32 %v832_v47, %v2088_v59 }
 0x249   :  { %v836_v54 = vadd.f32 %v835_v51, %v2014_v9  ;;  %v355_v9 = vadd.f32 %v1996_v61, %v2071_v44 }
 0x24b   :  { %1662 = vtanh.f32 %v836_v54 }
 0x251   :  { %v1663_v6 = vpop.eup %1662 }
 0x252   :  { %v839_v52 = vmul.f32 %v1663_v6, %v838_v63 }
 0x254   :  { %v2125_v29 = vadd.f32 %v840_v46, %v839_v52 }
 0x256   :  { %v843_v37 = vpack.c.bf16 %v2125_v29, %v2125_v29 }
 0x258   :  { %1561 = vst [vmem:[%s2260_s6 + $0x8] sm:$0xf] %v843_v37  ;;  %860 = vmatmul.bf16.vlgmr.msrb.gmra.mxu3 %v843_v37  ;;  %873 = vmatmul.bf16.vlgmr.msrb.gmra.mxu0 %v843_v37 }
 0x259   :  { %886 = vmatmul.bf16.vlgmr.msrb.gmra.mxu1 %v843_v37  ;;  %1072 = vmatpush.bf16.msrb.mxu3 %v1852_v12 }
 0x25a   :  { %1143 = vmatpush.bf16.msrb.mxu0 %v1819_v7  ;;  %1156 = vmatpush.bf16.msrb.mxu1 %v1854_v15 }
 0x25d   :  { %1073 = vmatpush.bf16.msrb.mxu3 %v1862_v28 }
 0x25e   :  { %1144 = vmatpush.bf16.msrb.mxu0 %v1822_v11  ;;  %1157 = vmatpush.bf16.msrb.mxu1 %v1865_v30 }
 0x261   :  { %1074 = vmatpush.bf16.msrb.mxu3 %v1870_v42 }
 0x262   :  { %1145 = vmatpush.bf16.msrb.mxu0 %v1825_v17  ;;  %1158 = vmatpush.bf16.msrb.mxu1 %v1873_v43 }
 0x265   :  { %1075 = vmatpush.bf16.msrb.mxu3 %v1876_v55 }
 0x266   :  { %1146 = vmatpush.bf16.msrb.mxu0 %v1828_v23  ;;  %1159 = vmatpush.bf16.msrb.mxu1 %v1879_v56 }
 0x269   :  { %1076 = vmatpush.bf16.msrb.mxu3 %v1882_v2 }
 0x26a   :  { %1147 = vmatpush.bf16.msrb.mxu0 %v1831_v34  ;;  %1160 = vmatpush.bf16.msrb.mxu1 %v1885_v3 }
 0x26d   :  { %1077 = vmatpush.bf16.msrb.mxu3 %v1893_v18 }
 0x26e   :  { %1148 = vmatpush.bf16.msrb.mxu0 %v1834_v45  ;;  %1161 = vmatpush.bf16.msrb.mxu1 %v1896_v19 }
 0x271   :  { %1078 = vmatpush.bf16.msrb.mxu3 %v1900_v31 }
 0x272   :  { %1149 = vmatpush.bf16.msrb.mxu0 %v1837_v58  ;;  %1162 = vmatpush.bf16.msrb.mxu1 %v1903_v32 }
 0x275   :  { %1079 = vmatpush.bf16.msrb.mxu3 %v1908_v38 }
 0x276   :  { %1150 = vmatpush.bf16.msrb.mxu0 %v1840_v8  ;;  %1163 = vmatpush.bf16.msrb.mxu1 %v1911_v39 }
 0x2d5   :  { %v874_v59 = vpop.f32.mrf.mxu0 }
 0x2d6   :  { %v911_v25 = vadd.f32 %v874_v59, %v355_v9  ;;  %v887_v50 = vpop.f32.mrf.mxu1 }
 0x2d7   :  { %v931_v9 = vadd.f32 %v2021_v60, %v887_v50 }
 0x2d8   :  { %v1563_v26 = vmul.f32 -1.442695, %v911_v25 }
 0x2da   :  { %1664 = vpow2.f32 %v1563_v26 }
 0x2db   :  { %v861_v40 = vpop.f32.mrf.mxu3 }
 0x2dc   :  { %v891_v16 = vadd.f32 %v861_v40, %v1991_v57 }
 0x2dd   :  { %v876_v49 = vpop.f32.mrf.mxu0 }
 0x2de   :  { %v1562_v62 = vmul.f32 -1.442695, %v891_v16  ;;  %v889_v4 = vpop.f32.mrf.mxu1 }
 0x2e0   :  { %v1665_v21 = vpop.eup %1664  ;;  %1666 = vpow2.f32 %v1562_v62 }
 0x2e1   :  { %v915_v41 = vadd.f32 1.0, %v1665_v21 }
 0x2e3   :  { %v863_v35 = vpop.f32.mrf.mxu3  ;;  %1668 = vrcp.f32 %v915_v41  ;;  %v927_v40 = vand.u32 2147483648, %v915_v41  ;;  %vm921_vm13 = vweird.f32 %v915_v41  ;;  %v925_v49 = vand.u32 2147483647, %v915_v41 }
 0x2e5   :  { %v928_v21 = vor.u32 1.1754944e-38, %v927_v40  ;;  %vm926_vm15 = vcmp.eq.f32.partialorder %v925_v49, 8.507059e+37 }
 0x2e6   :  { %v1667_v48 = vpop.eup %1666 }
 0x2e7   :  { %v895_v51 = vadd.f32 1.0, %v1667_v48 }
 0x2e9   :  { %1670 = vrcp.f32 %v895_v51  ;;  %v1669_v44 = vpop.eup %1668  ;;  %v907_v63 = vand.u32 2147483648, %v895_v51  ;;  %v905_v57 = vand.u32 2147483647, %v895_v51  ;;  %vm901_vm9 = vweird.f32 %v895_v51 }
 0x2ea   :  { %v917_v53 = vmul.f32 %v1669_v44, %v915_v41  ;;  %vm922_vm12 = vweird.f32 %v1669_v44 }
 0x2eb   :  { %v908_v37 = vor.u32 1.1754944e-38, %v907_v63  ;;  %vm906_vm11 = vcmp.eq.f32.partialorder %v905_v57, 8.507059e+37  ;;  %vm923_vm14 = vmor %vm921_vm13, %vm922_vm12 }
 0x2ec   :  { %v918_v27 = vsub.f32 1.0, %v917_v53 }
 0x2ee   :  { %v919_v52 = vmul.f32 %v1669_v44, %v918_v27 }
 0x2ef   :  { %v1671_v54 = vpop.eup %1670 }
 0x2f0   :  { %v897_v5 = vmul.f32 %v1671_v54, %v895_v51  ;;  %vm902_vm8 = vweird.f32 %v1671_v54  ;;  %v920_v26 = vadd.f32 %v1669_v44, %v919_v52 }
 0x2f1   :  { %vm903_vm10 = vmor %vm901_vm9, %vm902_vm8 }
 0x2f2   :  { %v898_v47 = vsub.f32 1.0, %v897_v5  ;;  %v924_v4 = vsel %vm923_vm14, %v1669_v44, %v920_v26 }
 0x2f3   :  { %v929_v35 = vsel %vm926_vm15, %v928_v21, %v924_v4 }
 0x2f4   :  { %v899_v6 = vmul.f32 %v1671_v54, %v898_v47  ;;  %v935_v48 = vsub.f32 1.0, %v929_v35  ;;  %v937_v53 = vmul.f32 %v929_v35, %v2125_v29 }
 0x2f6   :  { %v900_v46 = vadd.f32 %v1671_v54, %v899_v6 }
 0x2f8   :  { %v904_v59 = vsel %vm903_vm10, %v1671_v54, %v900_v46 }
 0x2f9   :  { %v909_v25 = vsel %vm906_vm11, %v908_v37, %v904_v59 }
 0x2fa   :  { %v932_v16 = vmul.f32 %v931_v9, %v909_v25 }
 0x2fc   :  { %v933_v62 = vadd.f32 %v932_v16, %v2024_v1 }
 0x2fe   :  { %1672 = vtanh.f32 %v933_v62 }
 0x304   :  { %v1673_v51 = vpop.eup %1672 }
 0x305   :  { %v936_v50 = vmul.f32 %v1673_v51, %v935_v48 }
 0x307   :  { %v2162_v54 = vadd.f32 %v937_v53, %v936_v50 }
 0x309   :  { %v940_v5 = vpack.c.bf16 %v2162_v54, %v2162_v54 }
 0x30b   :  { %1564 = vst [vmem:[%s2260_s6 + $0xc] sm:$0xf] %v940_v5  ;;  %957 = vmatmul.bf16.vlgmr.msrb.gmra.mxu2 %v940_v5  ;;  %970 = vmatmul.bf16.vlgmr.msra.gmra.mxu3 %v940_v5 }
 0x30c   :  { %983 = vmatmul.bf16.vlgmr.msra.gmra.mxu0 %v940_v5  ;;  %1169 = vmatpush.bf16.msrb.mxu2 %v1852_v12 }
 0x30d   :  { %1240 = vmatpush.bf16.msra.mxu3 %v1819_v7  ;;  %1253 = vmatpush.bf16.msra.mxu0 %v1854_v15 }
 0x310   :  { %1170 = vmatpush.bf16.msrb.mxu2 %v1862_v28 }
 0x311   :  { %1241 = vmatpush.bf16.msra.mxu3 %v1822_v11  ;;  %1254 = vmatpush.bf16.msra.mxu0 %v1865_v30  ;;  %v358_v11 = vadd.f32 %v1996_v61, %v2073_v13 }
 0x314   :  { %1171 = vmatpush.bf16.msrb.mxu2 %v1870_v42 }
 0x315   :  { %1242 = vmatpush.bf16.msra.mxu3 %v1825_v17  ;;  %1255 = vmatpush.bf16.msra.mxu0 %v1873_v43 }
 0x318   :  { %1172 = vmatpush.bf16.msrb.mxu2 %v1876_v55 }
 0x319   :  { %1243 = vmatpush.bf16.msra.mxu3 %v1828_v23  ;;  %1256 = vmatpush.bf16.msra.mxu0 %v1879_v56 }
 0x31c   :  { %1173 = vmatpush.bf16.msrb.mxu2 %v1882_v2 }
 0x31d   :  { %1244 = vmatpush.bf16.msra.mxu3 %v1831_v34  ;;  %1257 = vmatpush.bf16.msra.mxu0 %v1885_v3 }
 0x320   :  { %1174 = vmatpush.bf16.msrb.mxu2 %v1893_v18 }
 0x321   :  { %1245 = vmatpush.bf16.msra.mxu3 %v1834_v45  ;;  %1258 = vmatpush.bf16.msra.mxu0 %v1896_v19 }
 0x324   :  { %1175 = vmatpush.bf16.msrb.mxu2 %v1900_v31 }
 0x325   :  { %1246 = vmatpush.bf16.msra.mxu3 %v1837_v58  ;;  %1259 = vmatpush.bf16.msra.mxu0 %v1903_v32 }
 0x328   :  { %1176 = vmatpush.bf16.msrb.mxu2 %v1908_v38 }
 0x329   :  { %1247 = vmatpush.bf16.msra.mxu3 %v1840_v8  ;;  %1260 = vmatpush.bf16.msra.mxu0 %v1911_v39 }
 0x389   :  { %v984_v7 = vpop.f32.mrf.mxu0 }
 0x38a   :  { %v1028_v52 = vadd.f32 %v2021_v60, %v984_v7 }
 0x38e   :  { %v958_v17 = vpop.f32.mrf.mxu2  ;;  %v971_v23 = vpop.f32.mrf.mxu3 }
 0x38f   :  { %v988_v34 = vadd.f32 %v958_v17, %v1998_v0  ;;  %v1008_v45 = vadd.f32 %v971_v23, %v358_v11 }
 0x391   :  { %v1565_v15 = vmul.f32 -1.442695, %v988_v34  ;;  %v1566_v30 = vmul.f32 -1.442695, %v1008_v45  ;;  %v986_v58 = vpop.f32.mrf.mxu0 }
 0x393   :  { %1674 = vpow2.f32 %v1565_v15 }
 0x394   :  { %1676 = vpow2.f32 %v1566_v30 }
 0x396   :  { %v960_v43 = vpop.f32.mrf.mxu2  ;;  %v973_v56 = vpop.f32.mrf.mxu3 }
 0x399   :  { %v1675_v3 = vpop.eup %1674 }
 0x39a   :  { %v1677_v8 = vpop.eup %1676  ;;  %v992_v19 = vadd.f32 1.0, %v1675_v3 }
 0x39b   :  { %v1012_v32 = vadd.f32 1.0, %v1677_v8 }
 0x39c   :  { %1678 = vrcp.f32 %v992_v19  ;;  %v1004_v0 = vand.u32 2147483648, %v992_v19  ;;  %v1002_v47 = vand.u32 2147483647, %v992_v19  ;;  %vm998_vm1 = vweird.f32 %v992_v19 }
 0x39d   :  { %1680 = vrcp.f32 %v1012_v32  ;;  %v1024_v25 = vand.u32 2147483648, %v1012_v32  ;;  %vm1018_vm5 = vweird.f32 %v1012_v32  ;;  %v1022_v26 = vand.u32 2147483647, %v1012_v32 }
 0x39e   :  { %v1005_v57 = vor.u32 1.1754944e-38, %v1004_v0  ;;  %vm1003_vm3 = vcmp.eq.f32.partialorder %v1002_v47, 8.507059e+37 }
 0x39f   :  { %v1025_v49 = vor.u32 1.1754944e-38, %v1024_v25  ;;  %vm1023_vm7 = vcmp.eq.f32.partialorder %v1022_v26, 8.507059e+37 }
 0x3a2   :  { %v1679_v39 = vpop.eup %1678 }
 0x3a3   :  { %v1681_v1 = vpop.eup %1680  ;;  %v994_v13 = vmul.f32 %v1679_v39, %v992_v19  ;;  %vm999_vm0 = vweird.f32 %v1679_v39 }
 0x3a4   :  { %v1014_v29 = vmul.f32 %v1681_v1, %v1012_v32  ;;  %vm1000_vm2 = vmor %vm998_vm1, %vm999_vm0  ;;  %vm1019_vm4 = vweird.f32 %v1681_v1 }
 0x3a5   :  { %v995_v41 = vsub.f32 1.0, %v994_v13  ;;  %vm1020_vm6 = vmor %vm1018_vm5, %vm1019_vm4 }
 0x3a6   :  { %v1015_v44 = vsub.f32 1.0, %v1014_v29 }
 0x3a7   :  { %v996_v27 = vmul.f32 %v1679_v39, %v995_v41 }
 0x3a8   :  { %v1016_v63 = vmul.f32 %v1681_v1, %v1015_v44 }
 0x3a9   :  { %v997_v6 = vadd.f32 %v1679_v39, %v996_v27 }
 0x3aa   :  { %v1017_v9 = vadd.f32 %v1681_v1, %v1016_v63 }
 0x3ab   :  { %v1001_v46 = vsel %vm1000_vm2, %v1679_v39, %v997_v6 }
 0x3ac   :  { %v1006_v37 = vsel %vm1003_vm3, %v1005_v57, %v1001_v46  ;;  %v1021_v16 = vsel %vm1020_vm6, %v1681_v1, %v1017_v9 }
 0x3ad   :  { %v1029_v59 = vmul.f32 %v1028_v52, %v1006_v37  ;;  %v1026_v62 = vsel %vm1023_vm7, %v1025_v49, %v1021_v16 }
 0x3ae   :  { %v1032_v4 = vsub.f32 1.0, %v1026_v62  ;;  %v1034_v48 = vmul.f32 %v1026_v62, %v2162_v54 }
 0x3af   :  { %v1030_v40 = vadd.f32 %v1029_v59, %v2029_v24 }
 0x3b1   :  { %1682 = vtanh.f32 %v1030_v40 }
 0x3b7   :  { %v1683_v21 = vpop.eup %1682 }
 0x3b8   :  { %v1033_v35 = vmul.f32 %v1683_v21, %v1032_v4 }
 0x3ba   :  { %v2199_v51 = vadd.f32 %v1034_v48, %v1033_v35 }
 0x3bc   :  { %v1037_v50 = vpack.c.bf16 %v2199_v51, %v2199_v51 }
 0x3be   :  { %1567 = vst [vmem:[%s2260_s6 + $0x10] sm:$0xf] %v1037_v50  ;;  %1054 = vmatmul.bf16.vlgmr.msra.gmra.mxu1 %v1037_v50  ;;  %1067 = vmatmul.bf16.vlgmr.msra.gmra.mxu2 %v1037_v50 }
 0x3bf   :  { %1080 = vmatmul.bf16.vlgmr.msrb.gmra.mxu3 %v1037_v50  ;;  %1266 = vmatpush.bf16.msra.mxu1 %v1852_v12  ;;  %v361_v12 = vadd.f32 %v1996_v61, %v2075_v14 }
 0x3c3   :  { %1267 = vmatpush.bf16.msra.mxu1 %v1862_v28 }
 0x3c7   :  { %1268 = vmatpush.bf16.msra.mxu1 %v1870_v42 }
 0x3cb   :  { %1269 = vmatpush.bf16.msra.mxu1 %v1876_v55 }
 0x3cf   :  { %1270 = vmatpush.bf16.msra.mxu1 %v1882_v2 }
 0x3d3   :  { %1271 = vmatpush.bf16.msra.mxu1 %v1893_v18 }
 0x3d7   :  { %1272 = vmatpush.bf16.msra.mxu1 %v1900_v31 }
 0x3db   :  { %1273 = vmatpush.bf16.msra.mxu1 %v1908_v38 }
 0x43b   :  { %v1055_v24 = vpop.f32.mrf.mxu1 }
 0x43c   :  { %v1085_v53 = vadd.f32 %v1055_v24, %v2009_v22 }
 0x43e   :  { %v1568_v54 = vmul.f32 -1.442695, %v1085_v53 }
 0x440   :  { %1684 = vpow2.f32 %v1568_v54 }
 0x441   :  { %v1068_v28 = vpop.f32.mrf.mxu2 }
 0x442   :  { %v1105_v42 = vadd.f32 %v1068_v28, %v361_v12  ;;  %v1081_v5 = vpop.f32.mrf.mxu3 }
 0x443   :  { %v1057_v55 = vpop.f32.mrf.mxu1  ;;  %v1125_v19 = vadd.f32 %v2021_v60, %v1081_v5 }
 0x444   :  { %v1569_v7 = vmul.f32 -1.442695, %v1105_v42 }
 0x446   :  { %v1685_v2 = vpop.eup %1684  ;;  %1686 = vpow2.f32 %v1569_v7 }
 0x447   :  { %v1089_v18 = vadd.f32 1.0, %v1685_v2 }
 0x449   :  { %1688 = vrcp.f32 %v1089_v18  ;;  %v1070_v31 = vpop.f32.mrf.mxu2  ;;  %v1101_v45 = vand.u32 2147483648, %v1089_v18  ;;  %v1099_v15 = vand.u32 2147483647, %v1089_v18  ;;  %vm1095_vm9 = vweird.f32 %v1089_v18 }
 0x44a   :  { %v1083_v11 = vpop.f32.mrf.mxu3 }
 0x44b   :  { %v1102_v56 = vor.u32 1.1754944e-38, %v1101_v45  ;;  %vm1100_vm11 = vcmp.eq.f32.partialorder %v1099_v15, 8.507059e+37 }
 0x44c   :  { %v1687_v38 = vpop.eup %1686 }
 0x44d   :  { %v1109_v17 = vadd.f32 1.0, %v1687_v38 }
 0x44f   :  { %v1689_v23 = vpop.eup %1688  ;;  %1690 = vrcp.f32 %v1109_v17  ;;  %v1121_v1 = vand.u32 2147483648, %v1109_v17  ;;  %v1119_v29 = vand.u32 2147483647, %v1109_v17  ;;  %vm1115_vm13 = vweird.f32 %v1109_v17 }
 0x450   :  { %v1091_v22 = vmul.f32 %v1689_v23, %v1089_v18  ;;  %vm1096_vm8 = vweird.f32 %v1689_v23 }
 0x451   :  { %vm1097_vm10 = vmor %vm1095_vm9, %vm1096_vm8  ;;  %v1122_v44 = vor.u32 1.1754944e-38, %v1121_v1  ;;  %vm1120_vm15 = vcmp.eq.f32.partialorder %v1119_v29, 8.507059e+37  ;;  %v2266_v29 = vld [vmem:[#allocation10_spill] sm:$0xff] }
 0x452   :  { %v1092_v34 = vsub.f32 1.0, %v1091_v22 }
 0x454   :  { %v1093_v14 = vmul.f32 %v1689_v23, %v1092_v34 }
 0x455   :  { %v1691_v30 = vpop.eup %1690 }
 0x456   :  { %v1111_v58 = vmul.f32 %v1691_v30, %v1109_v17  ;;  %v1094_v43 = vadd.f32 %v1689_v23, %v1093_v14  ;;  %vm1116_vm12 = vweird.f32 %v1691_v30 }
 0x457   :  { %vm1117_vm14 = vmor %vm1115_vm13, %vm1116_vm12 }
 0x458   :  { %v1112_v3 = vsub.f32 1.0, %v1111_v58  ;;  %v1098_v8 = vsel %vm1097_vm10, %v1689_v23, %v1094_v43 }
 0x459   :  { %v1103_v32 = vsel %vm1100_vm11, %v1102_v56, %v1098_v8 }
 0x45a   :  { %v1113_v39 = vmul.f32 %v1691_v30, %v1112_v3  ;;  %v1126_v13 = vmul.f32 %v1125_v19, %v1103_v32  ;;  %v2265_v3 = vld [vmem:[#allocation11_spill] sm:$0xff] }
 0x45c   :  { %v1127_v41 = vadd.f32 %v1126_v13, %v2033_v33  ;;  %v1114_v0 = vadd.f32 %v1691_v30, %v1113_v39  ;;  %v364_v33 = vadd.f32 %v1996_v61, %v2077_v20 }
 0x45e   :  { %1692 = vtanh.f32 %v1127_v41  ;;  %v1118_v27 = vsel %vm1117_vm14, %v1691_v30, %v1114_v0 }
 0x45f   :  { %v1123_v47 = vsel %vm1120_vm15, %v1122_v44, %v1118_v27 }
 0x460   :  { %v1129_v63 = vsub.f32 1.0, %v1123_v47  ;;  %v1131_v52 = vmul.f32 %v1123_v47, %v2199_v51 }
 0x464   :  { %v1693_v6 = vpop.eup %1692 }
 0x465   :  { %v1130_v57 = vmul.f32 %v1693_v6, %v1129_v63 }
 0x467   :  { %v1132_v46 = vadd.f32 %v1131_v52, %v1130_v57 }
 0x469   :  { %v1134_v37 = vpack.c.bf16 %v1132_v46, %v1132_v46 }
 0x46b   :  { %1570 = vst [vmem:[%s2260_s6 + $0x14] sm:$0xf] %v1134_v37  ;;  %1151 = vmatmul.bf16.vlgmr.msrb.gmra.mxu0 %v1134_v37  ;;  %1164 = vmatmul.bf16.vlgmr.msrb.gmra.mxu1 %v1134_v37 }
 0x46c   :  { %1177 = vmatmul.bf16.vlgmr.msrb.gmra.mxu2 %v1134_v37 }
 0x4e8   :  { %v1152_v9 = vpop.f32.mrf.mxu0  ;;  %v1165_v59 = vpop.f32.mrf.mxu1 }
 0x4e9   :  { %v1182_v25 = vadd.f32 %v1152_v9, %v2011_v36  ;;  %v1202_v26 = vadd.f32 %v1165_v59, %v364_v33 }
 0x4eb   :  { %v1571_v40 = vmul.f32 -1.442695, %v1182_v25  ;;  %v1572_v16 = vmul.f32 -1.442695, %v1202_v26 }
 0x4ed   :  { %1694 = vpow2.f32 %v1571_v40 }
 0x4ee   :  { %1696 = vpow2.f32 %v1572_v16 }
 0x4ef   :  { %v1178_v49 = vpop.f32.mrf.mxu2 }
 0x4f0   :  { %v1154_v62 = vpop.f32.mrf.mxu0  ;;  %v1167_v4 = vpop.f32.mrf.mxu1  ;;  %v1222_v18 = vadd.f32 %v2021_v60, %v1178_v49 }
 0x4f3   :  { %v1695_v21 = vpop.eup %1694 }
 0x4f4   :  { %v1697_v35 = vpop.eup %1696  ;;  %v1186_v48 = vadd.f32 1.0, %v1695_v21  ;;  %v1715_v21 = vld [vmem:[%s2258_s4] ss:$0 sm:$0xff] }
 0x4f5   :  { %v1206_v51 = vadd.f32 1.0, %v1697_v35 }
 0x4f6   :  { %1698 = vrcp.f32 %v1186_v48  ;;  %v1198_v12 = vand.u32 2147483648, %v1186_v48  ;;  %v1196_v42 = vand.u32 2147483647, %v1186_v48  ;;  %vm1192_vm1 = vweird.f32 %v1186_v48 }
 0x4f7   :  { %1700 = vrcp.f32 %v1206_v51  ;;  %v1180_v50 = vpop.f32.mrf.mxu2  ;;  %v1218_v38 = vand.u32 2147483648, %v1206_v51  ;;  %vm1212_vm5 = vweird.f32 %v1206_v51  ;;  %v1216_v23 = vand.u32 2147483647, %v1206_v51 }
 0x4f8   :  { %v1199_v7 = vor.u32 1.1754944e-38, %v1198_v12  ;;  %vm1197_vm3 = vcmp.eq.f32.partialorder %v1196_v42, 8.507059e+37 }
 0x4f9   :  { %v1219_v45 = vor.u32 1.1754944e-38, %v1218_v38  ;;  %vm1217_vm7 = vcmp.eq.f32.partialorder %v1216_v23, 8.507059e+37 }
 0x4fc   :  { %v1699_v61 = vpop.eup %1698 }
 0x4fd   :  { %v1701_v20 = vpop.eup %1700  ;;  %v1188_v24 = vmul.f32 %v1699_v61, %v1186_v48  ;;  %vm1193_vm0 = vweird.f32 %v1699_v61 }
 0x4fe   :  { %v1208_v53 = vmul.f32 %v1701_v20, %v1206_v51  ;;  %vm1194_vm2 = vmor %vm1192_vm1, %vm1193_vm0  ;;  %vm1213_vm4 = vweird.f32 %v1701_v20 }
 0x4ff   :  { %v1189_v36 = vsub.f32 1.0, %v1188_v24  ;;  %vm1214_vm6 = vmor %vm1212_vm5, %vm1213_vm4 }
 0x500   :  { %v1209_v54 = vsub.f32 1.0, %v1208_v53 }
 0x501   :  { %v1190_v28 = vmul.f32 %v1699_v61, %v1189_v36 }
 0x502   :  { %v1210_v5 = vmul.f32 %v1701_v20, %v1209_v54 }
 0x503   :  { %v1191_v55 = vadd.f32 %v1699_v61, %v1190_v28 }
 0x504   :  { %v1211_v11 = vadd.f32 %v1701_v20, %v1210_v5 }
 0x505   :  { %v1195_v2 = vsel %vm1194_vm2, %v1699_v61, %v1191_v55  ;;  %v1716_v61 = vld [vmem:[%s2256_s2 + $0x10] sm:$0xff] }
 0x506   :  { %v1200_v31 = vsel %vm1197_vm3, %v1199_v7, %v1195_v2  ;;  %v1215_v34 = vsel %vm1214_vm6, %v1701_v20, %v1211_v11  ;;  %v2267_v20 = vld [vmem:[#allocation12_spill] sm:$0xff] }
 0x507   :  { %v1223_v17 = vmul.f32 %v1222_v18, %v1200_v31  ;;  %v1220_v14 = vsel %vm1217_vm7, %v1219_v45, %v1215_v34  ;;  %v368_v24 = vadd.f32 %v1716_v61, %v2267_v20 }
 0x508   :  { %v1226_v15 = vsub.f32 1.0, %v1220_v14  ;;  %v1228_v43 = vmul.f32 %v1220_v14, %v1132_v46 }
 0x509   :  { %v1224_v22 = vadd.f32 %v1223_v17, %v2044_v10  ;;  %v1714_v10 = vld [vmem:[%s2256_s2 + $0x8] sm:$0xff] }
 0x50a   :  { %v367_v8 = vadd.f32 %v1714_v10, %v2265_v3 }
 0x50b   :  { %1702 = vtanh.f32 %v1224_v22 }
 0x511   :  { %v1703_v30 = vpop.eup %1702 }
 0x512   :  { %v1227_v58 = vmul.f32 %v1703_v30, %v1226_v15 }
 0x514   :  { %v2228_v60 = vadd.f32 %v1228_v43, %v1227_v58 }
 0x516   :  { %v1231_v56 = vpack.c.bf16 %v2228_v60, %v2228_v60 }
 0x518   :  { %1573 = vst [vmem:[%s2260_s6 + $0x18] sm:$0xf] %v1231_v56  ;;  %1248 = vmatmul.bf16.vlgmr.msra.gmra.mxu3 %v1231_v56  ;;  %1261 = vmatmul.bf16.vlgmr.msra.gmra.mxu0 %v1231_v56 }
 0x519   :  { %1274 = vmatmul.bf16.vlgmr.msra.gmra.mxu1 %v1231_v56 }
 0x595   :  { %v1262_v19 = vpop.f32.mrf.mxu0 }
 0x596   :  { %v1299_v32 = vadd.f32 %v1262_v19, %v367_v8  ;;  %v1275_v39 = vpop.f32.mrf.mxu1 }
 0x597   :  { %v1319_v35 = vadd.f32 %v1715_v21, %v1275_v39 }
 0x598   :  { %v1575_v1 = vmul.f32 -1.442695, %v1299_v32 }
 0x59a   :  { %1704 = vpow2.f32 %v1575_v1 }
 0x59b   :  { %v1249_v13 = vpop.f32.mrf.mxu3 }
 0x59c   :  { %v1279_v41 = vadd.f32 %v1249_v13, %v2266_v29 }
 0x59d   :  { %v1264_v0 = vpop.f32.mrf.mxu0 }
 0x59e   :  { %v1574_v44 = vmul.f32 -1.442695, %v1279_v41  ;;  %v1277_v27 = vpop.f32.mrf.mxu1 }
 0x5a0   :  { %v1705_v47 = vpop.eup %1704  ;;  %1706 = vpow2.f32 %v1574_v44 }
 0x5a1   :  { %v1303_v63 = vadd.f32 1.0, %v1705_v47 }
 0x5a3   :  { %v1251_v6 = vpop.f32.mrf.mxu3  ;;  %1708 = vrcp.f32 %v1303_v63  ;;  %v1315_v53 = vand.u32 2147483648, %v1303_v63  ;;  %vm1309_vm13 = vweird.f32 %v1303_v63  ;;  %v1313_v54 = vand.u32 2147483647, %v1303_v63 }
 0x5a5   :  { %v1316_v42 = vor.u32 1.1754944e-38, %v1315_v53  ;;  %vm1314_vm15 = vcmp.eq.f32.partialorder %v1313_v54, 8.507059e+37 }
 0x5a6   :  { %v1707_v57 = vpop.eup %1706 }
 0x5a7   :  { %v1283_v52 = vadd.f32 1.0, %v1707_v57 }
 0x5a9   :  { %1710 = vrcp.f32 %v1283_v52  ;;  %v1709_v46 = vpop.eup %1708  ;;  %v1295_v26 = vand.u32 2147483648, %v1283_v52  ;;  %v1293_v16 = vand.u32 2147483647, %v1283_v52  ;;  %vm1289_vm9 = vweird.f32 %v1283_v52 }
 0x5aa   :  { %v1305_v37 = vmul.f32 %v1709_v46, %v1303_v63  ;;  %vm1310_vm12 = vweird.f32 %v1709_v46 }
 0x5ab   :  { %v1296_v4 = vor.u32 1.1754944e-38, %v1295_v26  ;;  %vm1294_vm11 = vcmp.eq.f32.partialorder %v1293_v16, 8.507059e+37  ;;  %vm1311_vm14 = vmor %vm1309_vm13, %vm1310_vm12 }
 0x5ac   :  { %v1306_v59 = vsub.f32 1.0, %v1305_v37 }
 0x5ae   :  { %v1307_v49 = vmul.f32 %v1709_v46, %v1306_v59 }
 0x5af   :  { %v1711_v33 = vpop.eup %1710 }
 0x5b0   :  { %v1285_v9 = vmul.f32 %v1711_v33, %v1283_v52  ;;  %vm1290_vm8 = vweird.f32 %v1711_v33  ;;  %v1308_v51 = vadd.f32 %v1709_v46, %v1307_v49 }
 0x5b1   :  { %vm1291_vm10 = vmor %vm1289_vm9, %vm1290_vm8 }
 0x5b2   :  { %v1286_v25 = vsub.f32 1.0, %v1285_v9  ;;  %v1312_v28 = vsel %vm1311_vm14, %v1709_v46, %v1308_v51 }
 0x5b3   :  { %v1317_v5 = vsel %vm1314_vm15, %v1316_v42, %v1312_v28 }
 0x5b4   :  { %v1287_v40 = vmul.f32 %v1711_v33, %v1286_v25  ;;  %v1323_v55 = vsub.f32 1.0, %v1317_v5  ;;  %v1325_v2 = vmul.f32 %v1317_v5, %v2228_v60 }
 0x5b6   :  { %v1288_v62 = vadd.f32 %v1711_v33, %v1287_v40 }
 0x5b8   :  { %v1292_v48 = vsel %vm1291_vm10, %v1711_v33, %v1288_v62 }
 0x5b9   :  { %v1297_v50 = vsel %vm1294_vm11, %v1296_v4, %v1292_v48 }
 0x5ba   :  { %v1320_v36 = vmul.f32 %v1319_v35, %v1297_v50 }
 0x5bc   :  { %v1321_v12 = vadd.f32 %v1320_v36, %v368_v24 }
 0x5be   :  { %1712 = vtanh.f32 %v1321_v12 }
 0x5c4   :  { %v1713_v7 = vpop.eup %1712 }
 0x5c5   :  { %v1324_v18 = vmul.f32 %v1713_v7, %v1323_v55 }
 0x5c7   :  { %v1326_v31 = vadd.f32 %v1325_v2, %v1324_v18 }
 0x5c9   :  { %v1328_v11 = vpack.c.bf16 %v1326_v31, %v1326_v31  ;;  %1335 = vst [vmem:[%s2261_s7] sm:$0xff] %v1326_v31 }
 0x5cb   :  { %1576 = vst [vmem:[%s2260_s6 + $0x1c] sm:$0xf] %v1328_v11 }
 0x5cc   :  { %1344 = vsyncpa [#allocation5], 1 }
 0x5cd   :  { %1345 = vsyncpa [#allocation7], 1 }

</bundles_post_ra>
